<compile_context>
chip_gen: v6e
topology: v6e:2x2x1
jax: 0.10.0
libtpu: 0.0.40
codegen_flags: <defaults>
</compile_context>

<pallas_src>
import functools

import jax
import jax.numpy as jnp
from jax import lax
from jax.experimental import pallas as pl
from jax.experimental.pallas import tpu as pltpu


def _layer_norm(x, gamma, beta, eps=1e-5):
    # PyTorch nn.LayerNorm semantics over the last dim (biased var, eps=1e-5).
    mean = jnp.mean(x, axis=-1, keepdims=True)
    var = jnp.mean((x - mean) ** 2, axis=-1, keepdims=True)
    return (x - mean) * lax.rsqrt(var + eps) * gamma + beta


def encoder_kernel(
    x_ref,
    wqkv_ref, bqkv_ref,
    wo_ref, bo_ref, g0_ref, beta0_ref,
    w1_ref, b1_ref, w2_ref, b2_ref, g1_ref, beta1_ref,
    out_ref,
    *, n_head: int, batch: int, seq: int,
):
    B, T = batch, seq
    x2 = x_ref[...].astype(jnp.float32)                      # (B*T, C)
    C = x2.shape[-1]
    D = C // n_head

    # --- MultiHeadAttnBlock ---
    # Fused Q|K|V projection: one MXU push with N = 3C (vs 3 pushes of N = C).
    # 1/sqrt(d_head) is already folded into the Q columns by the wrapper.
    qkv = (jnp.dot(x2, wqkv_ref[...], preferred_element_type=jnp.float32)
           + bqkv_ref[...])                                  # (B*T, 3C)

    wo = wo_ref[...]                                         # (C, C), load once

    # Accumulate the attention output projection per head (no lane-wise
    # concat of head outputs).  Start from residual + output-proj bias.
    acc = x2 + bo_ref[...]
    for h in range(n_head):                                  # static unroll
        lo = h * D
        qh = qkv[:, lo:lo + D].reshape(B, T, D)              # (B, T, D)
        kh = qkv[:, C + lo:C + lo + D].reshape(B, T, D)
        vh = qkv[:, 2 * C + lo:2 * C + lo + D].reshape(B, T, D)
        # Scores batched over B; q is already pre-scaled by 1/sqrt(d_head).
        s = jnp.einsum("btd,bsd->bts", qh, kh,
                       preferred_element_type=jnp.float32)   # (B, T, T)
        s = s - jnp.max(s, axis=-1, keepdims=True)
        e = jnp.exp(s)
        w = e * pl.reciprocal(jnp.sum(e, axis=-1, keepdims=True), approx=True)
        oh = jnp.einsum("bts,bsd->btd", w, vh,
                        preferred_element_type=jnp.float32)  # (B, T, D)
        acc = acc + jnp.dot(oh.reshape(B * T, D), wo[lo:lo + D, :],
                            preferred_element_type=jnp.float32)

    # TODO(synk): nn.Dropout(p=0.2) layers are identity in eval mode; not modeled.
    h_res = _layer_norm(acc, g0_ref[...], beta0_ref[...])    # attn block LN

    # --- Encoder FFN: Linear -> ReLU -> Linear -> ReLU -> (Dropout) ---
    ff = jnp.dot(h_res, w1_ref[...], preferred_element_type=jnp.float32) + b1_ref[...]
    ff = jnp.maximum(ff, 0.0)
    ff = jnp.dot(ff, w2_ref[...], preferred_element_type=jnp.float32) + b2_ref[...]
    ff = jnp.maximum(ff, 0.0)

    out = _layer_norm(ff + h_res, g1_ref[...], beta1_ref[...])   # ln1
    out_ref[...] = out.astype(out_ref.dtype)


def encoder_forward(x, params, n_head=8):
    """x: (B, T, C) float32.  params: dict of pre-transposed (in, out) weights."""
    B, T, C = x.shape
    hidden = params["w1"].shape[1]
    d_head = C // n_head
    scale = jnp.float32(d_head ** 0.5)

    # Fold 1/sqrt(d_head) into the Q projection and fuse Q|K|V so the kernel
    # does a single projection matmul.
    wqkv = jnp.concatenate(
        [params["wq"] / scale, params["wk"], params["wv"]], axis=1)   # (C, 3C)
    bqkv = jnp.concatenate(
        [params["bq"] / scale, params["bk"], params["bv"]], axis=1)   # (1, 3C)

    x2 = x.reshape(B * T, C)   # flatten batch into rows -> one kernel invocation

    full = lambda shape: pl.BlockSpec(shape, lambda i: (0, 0))

    in_specs = [
        full((B * T, C)),                       # x (flattened)
        full((C, 3 * C)), full((1, 3 * C)),     # fused wqkv, bqkv
        full((C, C)), full((1, C)),             # wo, bo
        full((1, C)), full((1, C)),             # ln0 gamma, beta
        full((C, hidden)), full((1, hidden)),   # w1, b1
        full((hidden, C)), full((1, C)),        # w2, b2
        full((1, C)), full((1, C)),             # ln1 gamma, beta
    ]

    kernel = functools.partial(encoder_kernel, n_head=n_head, batch=B, seq=T)
    out2 = pl.pallas_call(
        kernel,
        out_shape=jax.ShapeDtypeStruct((B * T, C), x.dtype),
        grid_spec=pltpu.PrefetchScalarGridSpec(
            num_scalar_prefetch=0,
            grid=(1,),
            in_specs=in_specs,
            out_specs=pl.BlockSpec((B * T, C), lambda i: (0, 0)),
        ),
        compiler_params=pltpu.CompilerParams(
            dimension_semantics=("arbitrary",)),
    )(
        x2, wqkv, bqkv,
        params["wo"], params["bo"], params["g0"], params["beta0"],
        params["w1"], params["b1"], params["w2"], params["b2"],
        params["g1"], params["beta1"],
    )
    return out2.reshape(B, T, C)


def encoder_reference(x, p, n_head=8):
    """Pure-JAX reference mirroring the PyTorch forward (eval mode)."""
    B, T, C = x.shape
    d_head = C // n_head
    scale = d_head ** 0.5

    def ln(y, g, b, eps=1e-5):
        m = jnp.mean(y, -1, keepdims=True)
        v = jnp.mean((y - m) ** 2, -1, keepdims=True)
        return (y - m) / jnp.sqrt(v + eps) * g + b

    q = x @ p["wq"] + p["bq"]
    k = x @ p["wk"] + p["bk"]
    v = x @ p["wv"] + p["bv"]
    q = q.reshape(B, T, n_head, d_head).transpose(0, 2, 1, 3)
    k = k.reshape(B, T, n_head, d_head).transpose(0, 2, 1, 3)
    v = v.reshape(B, T, n_head, d_head).transpose(0, 2, 1, 3)
    w = jax.nn.softmax(jnp.einsum("bhtd,bhsd->bhts", q, k) / scale, axis=-1)
    a = jnp.einsum("bhts,bhsd->bhtd", w, v).transpose(0, 2, 1, 3).reshape(B, T, C)
    h = ln(a @ p["wo"] + p["bo"] + x, p["g0"], p["beta0"])
    ff = jax.nn.relu(h @ p["w1"] + p["b1"])
    ff = jax.nn.relu(ff @ p["w2"] + p["b2"])
    return ln(ff + h, p["g1"], p["beta1"])


def make_params(key, C, hidden):
    ks = jax.random.split(key, 12)
    s = 0.05
    f = jnp.float32
    return {
        "wq": (jax.random.normal(ks[0], (C, C)) * s).astype(f),
        "bq": (jax.random.normal(ks[1], (1, C)) * s).astype(f),
        "wk": (jax.random.normal(ks[2], (C, C)) * s).astype(f),
        "bk": (jax.random.normal(ks[3], (1, C)) * s).astype(f),
        "wv": (jax.random.normal(ks[4], (C, C)) * s).astype(f),
        "bv": (jax.random.normal(ks[5], (1, C)) * s).astype(f),
        "wo": (jax.random.normal(ks[6], (C, C)) * s).astype(f),
        "bo": (jax.random.normal(ks[7], (1, C)) * s).astype(f),
        "g0": jnp.ones((1, C), f),
        "beta0": jnp.zeros((1, C), f),
        "w1": (jax.random.normal(ks[8], (C, hidden)) * s).astype(f),
        "b1": (jax.random.normal(ks[9], (1, hidden)) * s).astype(f),
        "w2": (jax.random.normal(ks[10], (hidden, C)) * s).astype(f),
        "b2": (jax.random.normal(ks[11], (1, C)) * s).astype(f),
        "g1": jnp.ones((1, C), f),
        "beta1": jnp.zeros((1, C), f),
    }


if __name__ == "__main__":
    # Encoder(in_channel=32, out_channel=32, n_head=8, ratio=4)
    B, T, C, n_head, ratio = 2, 8, 32, 8, 4
    hidden = C * ratio

    key = jax.random.PRNGKey(0)
    kx, kp = jax.random.split(key)
    x = jax.random.normal(kx, (B, T, C), dtype=jnp.float32)
    params = make_params(kp, C, hidden)

    out = encoder_forward(x, params, n_head=n_head)
    out = jax.block_until_ready(out)

    ref = encoder_reference(x, params, n_head=n_head)
    assert out.shape == (B, T, C)
    assert jnp.allclose(out, ref, rtol=1e-3, atol=1e-3), float(
        jnp.max(jnp.abs(out - ref)))

    print("KERNEL_OK")
</pallas_src>

<mosaic_0001>
module attributes {stable_mosaic.version = 11 : i64} {
  func.func @encoder_kernel(%arg0: i32, %arg1: memref<16x32xf32, #tpu.memory_space<vmem>>, %arg2: memref<32x96xf32, #tpu.memory_space<vmem>>, %arg3: memref<1x96xf32, #tpu.memory_space<vmem>>, %arg4: memref<32x32xf32, #tpu.memory_space<vmem>>, %arg5: memref<1x32xf32, #tpu.memory_space<vmem>>, %arg6: memref<1x32xf32, #tpu.memory_space<vmem>>, %arg7: memref<1x32xf32, #tpu.memory_space<vmem>>, %arg8: memref<32x128xf32, #tpu.memory_space<vmem>>, %arg9: memref<1x128xf32, #tpu.memory_space<vmem>>, %arg10: memref<128x32xf32, #tpu.memory_space<vmem>>, %arg11: memref<1x32xf32, #tpu.memory_space<vmem>>, %arg12: memref<1x32xf32, #tpu.memory_space<vmem>>, %arg13: memref<1x32xf32, #tpu.memory_space<vmem>>, %arg14: memref<16x32xf32, #tpu.memory_space<vmem>>) attributes {dimension_semantics = [#tpu.dimension_semantics<arbitrary>], iteration_bounds = array<i64: 1>, scalar_prefetch = 0 : i64, scratch_operands = 0 : i64, tpu.core_type = #tpu.core_type<tc>, window_params = [{pipeline_mode = #tpu.pipeline_mode<synchronous>, transform_indices = @transform_0, window_bounds = array<i64: 16, 32>}, {pipeline_mode = #tpu.pipeline_mode<synchronous>, transform_indices = @transform_1, window_bounds = array<i64: 32, 96>}, {pipeline_mode = #tpu.pipeline_mode<synchronous>, transform_indices = @transform_2, window_bounds = array<i64: 1, 96>}, {pipeline_mode = #tpu.pipeline_mode<synchronous>, transform_indices = @transform_3, window_bounds = array<i64: 32, 32>}, {pipeline_mode = #tpu.pipeline_mode<synchronous>, transform_indices = @transform_4, window_bounds = array<i64: 1, 32>}, {pipeline_mode = #tpu.pipeline_mode<synchronous>, transform_indices = @transform_5, window_bounds = array<i64: 1, 32>}, {pipeline_mode = #tpu.pipeline_mode<synchronous>, transform_indices = @transform_6, window_bounds = array<i64: 1, 32>}, {pipeline_mode = #tpu.pipeline_mode<synchronous>, transform_indices = @transform_7, window_bounds = array<i64: 32, 128>}, {pipeline_mode = #tpu.pipeline_mode<synchronous>, transform_indices = @transform_8, window_bounds = array<i64: 1, 128>}, {pipeline_mode = #tpu.pipeline_mode<synchronous>, transform_indices = @transform_9, window_bounds = array<i64: 128, 32>}, {pipeline_mode = #tpu.pipeline_mode<synchronous>, transform_indices = @transform_10, window_bounds = array<i64: 1, 32>}, {pipeline_mode = #tpu.pipeline_mode<synchronous>, transform_indices = @transform_11, window_bounds = array<i64: 1, 32>}, {pipeline_mode = #tpu.pipeline_mode<synchronous>, transform_indices = @transform_12, window_bounds = array<i64: 1, 32>}, {pipeline_mode = #tpu.pipeline_mode<synchronous>, transform_indices = @transform_13, window_bounds = array<i64: 16, 32>}]} {
    %c0 = arith.constant 0 : index
    %c0_0 = arith.constant 0 : index
    %0 = vector.load %arg1[%c0, %c0_0] : memref<16x32xf32, #tpu.memory_space<vmem>>, vector<16x32xf32>
    %c0_1 = arith.constant 0 : index
    %c0_2 = arith.constant 0 : index
    %1 = vector.load %arg2[%c0_1, %c0_2] : memref<32x96xf32, #tpu.memory_space<vmem>>, vector<32x96xf32>
    %cst = arith.constant dense<0.000000e+00> : vector<16x96xf32>
    %2 = tpu.matmul %0, %1, %cst {dimension_numbers = #tpu.dot_dimension_numbers<[1], [0], [0], [1], [0, 0, 1, 1], [], []>} : vector<16x32xf32>, vector<32x96xf32>, vector<16x96xf32> -> vector<16x96xf32>
    %c0_3 = arith.constant 0 : index
    %c0_4 = arith.constant 0 : index
    %3 = vector.load %arg3[%c0_3, %c0_4] : memref<1x96xf32, #tpu.memory_space<vmem>>, vector<1x96xf32>
    %4 = vector.broadcast %3 : vector<1x96xf32> to vector<16x96xf32>
    %5 = arith.addf %2, %4 : vector<16x96xf32>
    %c0_5 = arith.constant 0 : index
    %c0_6 = arith.constant 0 : index
    %6 = vector.load %arg4[%c0_5, %c0_6] : memref<32x32xf32, #tpu.memory_space<vmem>>, vector<32x32xf32>
    %c0_7 = arith.constant 0 : index
    %c0_8 = arith.constant 0 : index
    %7 = vector.load %arg5[%c0_7, %c0_8] : memref<1x32xf32, #tpu.memory_space<vmem>>, vector<1x32xf32>
    %8 = vector.broadcast %7 : vector<1x32xf32> to vector<16x32xf32>
    %9 = arith.addf %0, %8 : vector<16x32xf32>
    %10 = vector.extract_strided_slice %5 {offsets = [0, 0], sizes = [16, 4], strides = [1, 1]} : vector<16x96xf32> to vector<16x4xf32>
    %11 = vector.shape_cast %10 : vector<16x4xf32> to vector<2x8x4xf32>
    %12 = vector.extract_strided_slice %5 {offsets = [0, 32], sizes = [16, 4], strides = [1, 1]} : vector<16x96xf32> to vector<16x4xf32>
    %13 = vector.shape_cast %12 : vector<16x4xf32> to vector<2x8x4xf32>
    %14 = vector.extract_strided_slice %5 {offsets = [0, 64], sizes = [16, 4], strides = [1, 1]} : vector<16x96xf32> to vector<16x4xf32>
    %15 = vector.shape_cast %14 : vector<16x4xf32> to vector<2x8x4xf32>
    "tpu.trace_start"() <{level = 10 : i32, message = "btd,bsd->bts"}> : () -> ()
    %cst_9 = arith.constant dense<0.000000e+00> : vector<2x8x8xf32>
    %16 = tpu.matmul %11, %13, %cst_9 {dimension_numbers = #tpu.dot_dimension_numbers<[2], [2], [1], [1], [0, 0, 0, 1, 1, 1], [0], [0]>} : vector<2x8x4xf32>, vector<2x8x4xf32>, vector<2x8x8xf32> -> vector<2x8x8xf32>
    "tpu.trace_stop"() : () -> ()
    %cst_10 = arith.constant dense<0xFF800000> : vector<2x8xf32>
    %17 = vector.multi_reduction <maximumf>, %16, %cst_10 [2] : vector<2x8x8xf32> to vector<2x8xf32>
    %18 = vector.shape_cast %17 : vector<2x8xf32> to vector<2x8x1xf32>
    %19 = vector.broadcast %18 : vector<2x8x1xf32> to vector<2x8x8xf32>
    %20 = arith.subf %16, %19 : vector<2x8x8xf32>
    %21 = math.exp %20 : vector<2x8x8xf32>
    %cst_11 = arith.constant dense<0.000000e+00> : vector<2x8xf32>
    %22 = vector.multi_reduction <add>, %21, %cst_11 [2] : vector<2x8x8xf32> to vector<2x8xf32>
    %23 = vector.shape_cast %22 : vector<2x8xf32> to vector<2x8x1xf32>
    %24 = tpu.reciprocal %23 {approx = true} : vector<2x8x1xf32> -> vector<2x8x1xf32>
    %25 = vector.broadcast %24 : vector<2x8x1xf32> to vector<2x8x8xf32>
    %26 = arith.mulf %21, %25 : vector<2x8x8xf32>
    "tpu.trace_start"() <{level = 10 : i32, message = "bts,bsd->btd"}> : () -> ()
    %cst_12 = arith.constant dense<0.000000e+00> : vector<2x8x4xf32>
    %27 = tpu.matmul %26, %15, %cst_12 {dimension_numbers = #tpu.dot_dimension_numbers<[2], [1], [1], [2], [0, 0, 0, 1, 1, 2], [0], [0]>} : vector<2x8x8xf32>, vector<2x8x4xf32>, vector<2x8x4xf32> -> vector<2x8x4xf32>
    "tpu.trace_stop"() : () -> ()
    %28 = vector.shape_cast %27 : vector<2x8x4xf32> to vector<16x4xf32>
    %29 = vector.extract_strided_slice %6 {offsets = [0, 0], sizes = [4, 32], strides = [1, 1]} : vector<32x32xf32> to vector<4x32xf32>
    %cst_13 = arith.constant dense<0.000000e+00> : vector<16x32xf32>
    %30 = tpu.matmul %28, %29, %cst_13 {dimension_numbers = #tpu.dot_dimension_numbers<[1], [0], [0], [1], [0, 0, 1, 1], [], []>} : vector<16x4xf32>, vector<4x32xf32>, vector<16x32xf32> -> vector<16x32xf32>
    %31 = arith.addf %9, %30 : vector<16x32xf32>
    %32 = vector.extract_strided_slice %5 {offsets = [0, 4], sizes = [16, 4], strides = [1, 1]} : vector<16x96xf32> to vector<16x4xf32>
    %33 = vector.shape_cast %32 : vector<16x4xf32> to vector<2x8x4xf32>
    %34 = vector.extract_strided_slice %5 {offsets = [0, 36], sizes = [16, 4], strides = [1, 1]} : vector<16x96xf32> to vector<16x4xf32>
    %35 = vector.shape_cast %34 : vector<16x4xf32> to vector<2x8x4xf32>
    %36 = vector.extract_strided_slice %5 {offsets = [0, 68], sizes = [16, 4], strides = [1, 1]} : vector<16x96xf32> to vector<16x4xf32>
    %37 = vector.shape_cast %36 : vector<16x4xf32> to vector<2x8x4xf32>
    "tpu.trace_start"() <{level = 10 : i32, message = "btd,bsd->bts"}> : () -> ()
    %cst_14 = arith.constant dense<0.000000e+00> : vector<2x8x8xf32>
    %38 = tpu.matmul %33, %35, %cst_14 {dimension_numbers = #tpu.dot_dimension_numbers<[2], [2], [1], [1], [0, 0, 0, 1, 1, 1], [0], [0]>} : vector<2x8x4xf32>, vector<2x8x4xf32>, vector<2x8x8xf32> -> vector<2x8x8xf32>
    "tpu.trace_stop"() : () -> ()
    %cst_15 = arith.constant dense<0xFF800000> : vector<2x8xf32>
    %39 = vector.multi_reduction <maximumf>, %38, %cst_15 [2] : vector<2x8x8xf32> to vector<2x8xf32>
    %40 = vector.shape_cast %39 : vector<2x8xf32> to vector<2x8x1xf32>
    %41 = vector.broadcast %40 : vector<2x8x1xf32> to vector<2x8x8xf32>
    %42 = arith.subf %38, %41 : vector<2x8x8xf32>
    %43 = math.exp %42 : vector<2x8x8xf32>
    %cst_16 = arith.constant dense<0.000000e+00> : vector<2x8xf32>
    %44 = vector.multi_reduction <add>, %43, %cst_16 [2] : vector<2x8x8xf32> to vector<2x8xf32>
    %45 = vector.shape_cast %44 : vector<2x8xf32> to vector<2x8x1xf32>
    %46 = tpu.reciprocal %45 {approx = true} : vector<2x8x1xf32> -> vector<2x8x1xf32>
    %47 = vector.broadcast %46 : vector<2x8x1xf32> to vector<2x8x8xf32>
    %48 = arith.mulf %43, %47 : vector<2x8x8xf32>
    "tpu.trace_start"() <{level = 10 : i32, message = "bts,bsd->btd"}> : () -> ()
    %cst_17 = arith.constant dense<0.000000e+00> : vector<2x8x4xf32>
    %49 = tpu.matmul %48, %37, %cst_17 {dimension_numbers = #tpu.dot_dimension_numbers<[2], [1], [1], [2], [0, 0, 0, 1, 1, 2], [0], [0]>} : vector<2x8x8xf32>, vector<2x8x4xf32>, vector<2x8x4xf32> -> vector<2x8x4xf32>
    "tpu.trace_stop"() : () -> ()
    %50 = vector.shape_cast %49 : vector<2x8x4xf32> to vector<16x4xf32>
    %51 = vector.extract_strided_slice %6 {offsets = [4, 0], sizes = [4, 32], strides = [1, 1]} : vector<32x32xf32> to vector<4x32xf32>
    %cst_18 = arith.constant dense<0.000000e+00> : vector<16x32xf32>
    %52 = tpu.matmul %50, %51, %cst_18 {dimension_numbers = #tpu.dot_dimension_numbers<[1], [0], [0], [1], [0, 0, 1, 1], [], []>} : vector<16x4xf32>, vector<4x32xf32>, vector<16x32xf32> -> vector<16x32xf32>
    %53 = arith.addf %31, %52 : vector<16x32xf32>
    %54 = vector.extract_strided_slice %5 {offsets = [0, 8], sizes = [16, 4], strides = [1, 1]} : vector<16x96xf32> to vector<16x4xf32>
    %55 = vector.shape_cast %54 : vector<16x4xf32> to vector<2x8x4xf32>
    %56 = vector.extract_strided_slice %5 {offsets = [0, 40], sizes = [16, 4], strides = [1, 1]} : vector<16x96xf32> to vector<16x4xf32>
    %57 = vector.shape_cast %56 : vector<16x4xf32> to vector<2x8x4xf32>
    %58 = vector.extract_strided_slice %5 {offsets = [0, 72], sizes = [16, 4], strides = [1, 1]} : vector<16x96xf32> to vector<16x4xf32>
    %59 = vector.shape_cast %58 : vector<16x4xf32> to vector<2x8x4xf32>
    "tpu.trace_start"() <{level = 10 : i32, message = "btd,bsd->bts"}> : () -> ()
    %cst_19 = arith.constant dense<0.000000e+00> : vector<2x8x8xf32>
    %60 = tpu.matmul %55, %57, %cst_19 {dimension_numbers = #tpu.dot_dimension_numbers<[2], [2], [1], [1], [0, 0, 0, 1, 1, 1], [0], [0]>} : vector<2x8x4xf32>, vector<2x8x4xf32>, vector<2x8x8xf32> -> vector<2x8x8xf32>
    "tpu.trace_stop"() : () -> ()
    %cst_20 = arith.constant dense<0xFF800000> : vector<2x8xf32>
    %61 = vector.multi_reduction <maximumf>, %60, %cst_20 [2] : vector<2x8x8xf32> to vector<2x8xf32>
    %62 = vector.shape_cast %61 : vector<2x8xf32> to vector<2x8x1xf32>
    %63 = vector.broadcast %62 : vector<2x8x1xf32> to vector<2x8x8xf32>
    %64 = arith.subf %60, %63 : vector<2x8x8xf32>
    %65 = math.exp %64 : vector<2x8x8xf32>
    %cst_21 = arith.constant dense<0.000000e+00> : vector<2x8xf32>
    %66 = vector.multi_reduction <add>, %65, %cst_21 [2] : vector<2x8x8xf32> to vector<2x8xf32>
    %67 = vector.shape_cast %66 : vector<2x8xf32> to vector<2x8x1xf32>
    %68 = tpu.reciprocal %67 {approx = true} : vector<2x8x1xf32> -> vector<2x8x1xf32>
    %69 = vector.broadcast %68 : vector<2x8x1xf32> to vector<2x8x8xf32>
    %70 = arith.mulf %65, %69 : vector<2x8x8xf32>
    "tpu.trace_start"() <{level = 10 : i32, message = "bts,bsd->btd"}> : () -> ()
    %cst_22 = arith.constant dense<0.000000e+00> : vector<2x8x4xf32>
    %71 = tpu.matmul %70, %59, %cst_22 {dimension_numbers = #tpu.dot_dimension_numbers<[2], [1], [1], [2], [0, 0, 0, 1, 1, 2], [0], [0]>} : vector<2x8x8xf32>, vector<2x8x4xf32>, vector<2x8x4xf32> -> vector<2x8x4xf32>
    "tpu.trace_stop"() : () -> ()
    %72 = vector.shape_cast %71 : vector<2x8x4xf32> to vector<16x4xf32>
    %73 = vector.extract_strided_slice %6 {offsets = [8, 0], sizes = [4, 32], strides = [1, 1]} : vector<32x32xf32> to vector<4x32xf32>
    %cst_23 = arith.constant dense<0.000000e+00> : vector<16x32xf32>
    %74 = tpu.matmul %72, %73, %cst_23 {dimension_numbers = #tpu.dot_dimension_numbers<[1], [0], [0], [1], [0, 0, 1, 1], [], []>} : vector<16x4xf32>, vector<4x32xf32>, vector<16x32xf32> -> vector<16x32xf32>
    %75 = arith.addf %53, %74 : vector<16x32xf32>
    %76 = vector.extract_strided_slice %5 {offsets = [0, 12], sizes = [16, 4], strides = [1, 1]} : vector<16x96xf32> to vector<16x4xf32>
    %77 = vector.shape_cast %76 : vector<16x4xf32> to vector<2x8x4xf32>
    %78 = vector.extract_strided_slice %5 {offsets = [0, 44], sizes = [16, 4], strides = [1, 1]} : vector<16x96xf32> to vector<16x4xf32>
    %79 = vector.shape_cast %78 : vector<16x4xf32> to vector<2x8x4xf32>
    %80 = vector.extract_strided_slice %5 {offsets = [0, 76], sizes = [16, 4], strides = [1, 1]} : vector<16x96xf32> to vector<16x4xf32>
    %81 = vector.shape_cast %80 : vector<16x4xf32> to vector<2x8x4xf32>
    "tpu.trace_start"() <{level = 10 : i32, message = "btd,bsd->bts"}> : () -> ()
    %cst_24 = arith.constant dense<0.000000e+00> : vector<2x8x8xf32>
    %82 = tpu.matmul %77, %79, %cst_24 {dimension_numbers = #tpu.dot_dimension_numbers<[2], [2], [1], [1], [0, 0, 0, 1, 1, 1], [0], [0]>} : vector<2x8x4xf32>, vector<2x8x4xf32>, vector<2x8x8xf32> -> vector<2x8x8xf32>
    "tpu.trace_stop"() : () -> ()
    %cst_25 = arith.constant dense<0xFF800000> : vector<2x8xf32>
    %83 = vector.multi_reduction <maximumf>, %82, %cst_25 [2] : vector<2x8x8xf32> to vector<2x8xf32>
    %84 = vector.shape_cast %83 : vector<2x8xf32> to vector<2x8x1xf32>
    %85 = vector.broadcast %84 : vector<2x8x1xf32> to vector<2x8x8xf32>
    %86 = arith.subf %82, %85 : vector<2x8x8xf32>
    %87 = math.exp %86 : vector<2x8x8xf32>
    %cst_26 = arith.constant dense<0.000000e+00> : vector<2x8xf32>
    %88 = vector.multi_reduction <add>, %87, %cst_26 [2] : vector<2x8x8xf32> to vector<2x8xf32>
    %89 = vector.shape_cast %88 : vector<2x8xf32> to vector<2x8x1xf32>
    %90 = tpu.reciprocal %89 {approx = true} : vector<2x8x1xf32> -> vector<2x8x1xf32>
    %91 = vector.broadcast %90 : vector<2x8x1xf32> to vector<2x8x8xf32>
    %92 = arith.mulf %87, %91 : vector<2x8x8xf32>
    "tpu.trace_start"() <{level = 10 : i32, message = "bts,bsd->btd"}> : () -> ()
    %cst_27 = arith.constant dense<0.000000e+00> : vector<2x8x4xf32>
    %93 = tpu.matmul %92, %81, %cst_27 {dimension_numbers = #tpu.dot_dimension_numbers<[2], [1], [1], [2], [0, 0, 0, 1, 1, 2], [0], [0]>} : vector<2x8x8xf32>, vector<2x8x4xf32>, vector<2x8x4xf32> -> vector<2x8x4xf32>
    "tpu.trace_stop"() : () -> ()
    %94 = vector.shape_cast %93 : vector<2x8x4xf32> to vector<16x4xf32>
    %95 = vector.extract_strided_slice %6 {offsets = [12, 0], sizes = [4, 32], strides = [1, 1]} : vector<32x32xf32> to vector<4x32xf32>
    %cst_28 = arith.constant dense<0.000000e+00> : vector<16x32xf32>
    %96 = tpu.matmul %94, %95, %cst_28 {dimension_numbers = #tpu.dot_dimension_numbers<[1], [0], [0], [1], [0, 0, 1, 1], [], []>} : vector<16x4xf32>, vector<4x32xf32>, vector<16x32xf32> -> vector<16x32xf32>
    %97 = arith.addf %75, %96 : vector<16x32xf32>
    %98 = vector.extract_strided_slice %5 {offsets = [0, 16], sizes = [16, 4], strides = [1, 1]} : vector<16x96xf32> to vector<16x4xf32>
    %99 = vector.shape_cast %98 : vector<16x4xf32> to vector<2x8x4xf32>
    %100 = vector.extract_strided_slice %5 {offsets = [0, 48], sizes = [16, 4], strides = [1, 1]} : vector<16x96xf32> to vector<16x4xf32>
    %101 = vector.shape_cast %100 : vector<16x4xf32> to vector<2x8x4xf32>
    %102 = vector.extract_strided_slice %5 {offsets = [0, 80], sizes = [16, 4], strides = [1, 1]} : vector<16x96xf32> to vector<16x4xf32>
    %103 = vector.shape_cast %102 : vector<16x4xf32> to vector<2x8x4xf32>
    "tpu.trace_start"() <{level = 10 : i32, message = "btd,bsd->bts"}> : () -> ()
    %cst_29 = arith.constant dense<0.000000e+00> : vector<2x8x8xf32>
    %104 = tpu.matmul %99, %101, %cst_29 {dimension_numbers = #tpu.dot_dimension_numbers<[2], [2], [1], [1], [0, 0, 0, 1, 1, 1], [0], [0]>} : vector<2x8x4xf32>, vector<2x8x4xf32>, vector<2x8x8xf32> -> vector<2x8x8xf32>
    "tpu.trace_stop"() : () -> ()
    %cst_30 = arith.constant dense<0xFF800000> : vector<2x8xf32>
    %105 = vector.multi_reduction <maximumf>, %104, %cst_30 [2] : vector<2x8x8xf32> to vector<2x8xf32>
    %106 = vector.shape_cast %105 : vector<2x8xf32> to vector<2x8x1xf32>
    %107 = vector.broadcast %106 : vector<2x8x1xf32> to vector<2x8x8xf32>
    %108 = arith.subf %104, %107 : vector<2x8x8xf32>
    %109 = math.exp %108 : vector<2x8x8xf32>
    %cst_31 = arith.constant dense<0.000000e+00> : vector<2x8xf32>
    %110 = vector.multi_reduction <add>, %109, %cst_31 [2] : vector<2x8x8xf32> to vector<2x8xf32>
    %111 = vector.shape_cast %110 : vector<2x8xf32> to vector<2x8x1xf32>
    %112 = tpu.reciprocal %111 {approx = true} : vector<2x8x1xf32> -> vector<2x8x1xf32>
    %113 = vector.broadcast %112 : vector<2x8x1xf32> to vector<2x8x8xf32>
    %114 = arith.mulf %109, %113 : vector<2x8x8xf32>
    "tpu.trace_start"() <{level = 10 : i32, message = "bts,bsd->btd"}> : () -> ()
    %cst_32 = arith.constant dense<0.000000e+00> : vector<2x8x4xf32>
    %115 = tpu.matmul %114, %103, %cst_32 {dimension_numbers = #tpu.dot_dimension_numbers<[2], [1], [1], [2], [0, 0, 0, 1, 1, 2], [0], [0]>} : vector<2x8x8xf32>, vector<2x8x4xf32>, vector<2x8x4xf32> -> vector<2x8x4xf32>
    "tpu.trace_stop"() : () -> ()
    %116 = vector.shape_cast %115 : vector<2x8x4xf32> to vector<16x4xf32>
    %117 = vector.extract_strided_slice %6 {offsets = [16, 0], sizes = [4, 32], strides = [1, 1]} : vector<32x32xf32> to vector<4x32xf32>
    %cst_33 = arith.constant dense<0.000000e+00> : vector<16x32xf32>
    %118 = tpu.matmul %116, %117, %cst_33 {dimension_numbers = #tpu.dot_dimension_numbers<[1], [0], [0], [1], [0, 0, 1, 1], [], []>} : vector<16x4xf32>, vector<4x32xf32>, vector<16x32xf32> -> vector<16x32xf32>
    %119 = arith.addf %97, %118 : vector<16x32xf32>
    %120 = vector.extract_strided_slice %5 {offsets = [0, 20], sizes = [16, 4], strides = [1, 1]} : vector<16x96xf32> to vector<16x4xf32>
    %121 = vector.shape_cast %120 : vector<16x4xf32> to vector<2x8x4xf32>
    %122 = vector.extract_strided_slice %5 {offsets = [0, 52], sizes = [16, 4], strides = [1, 1]} : vector<16x96xf32> to vector<16x4xf32>
    %123 = vector.shape_cast %122 : vector<16x4xf32> to vector<2x8x4xf32>
    %124 = vector.extract_strided_slice %5 {offsets = [0, 84], sizes = [16, 4], strides = [1, 1]} : vector<16x96xf32> to vector<16x4xf32>
    %125 = vector.shape_cast %124 : vector<16x4xf32> to vector<2x8x4xf32>
    "tpu.trace_start"() <{level = 10 : i32, message = "btd,bsd->bts"}> : () -> ()
    %cst_34 = arith.constant dense<0.000000e+00> : vector<2x8x8xf32>
    %126 = tpu.matmul %121, %123, %cst_34 {dimension_numbers = #tpu.dot_dimension_numbers<[2], [2], [1], [1], [0, 0, 0, 1, 1, 1], [0], [0]>} : vector<2x8x4xf32>, vector<2x8x4xf32>, vector<2x8x8xf32> -> vector<2x8x8xf32>
    "tpu.trace_stop"() : () -> ()
    %cst_35 = arith.constant dense<0xFF800000> : vector<2x8xf32>
    %127 = vector.multi_reduction <maximumf>, %126, %cst_35 [2] : vector<2x8x8xf32> to vector<2x8xf32>
    %128 = vector.shape_cast %127 : vector<2x8xf32> to vector<2x8x1xf32>
    %129 = vector.broadcast %128 : vector<2x8x1xf32> to vector<2x8x8xf32>
    %130 = arith.subf %126, %129 : vector<2x8x8xf32>
    %131 = math.exp %130 : vector<2x8x8xf32>
    %cst_36 = arith.constant dense<0.000000e+00> : vector<2x8xf32>
    %132 = vector.multi_reduction <add>, %131, %cst_36 [2] : vector<2x8x8xf32> to vector<2x8xf32>
    %133 = vector.shape_cast %132 : vector<2x8xf32> to vector<2x8x1xf32>
    %134 = tpu.reciprocal %133 {approx = true} : vector<2x8x1xf32> -> vector<2x8x1xf32>
    %135 = vector.broadcast %134 : vector<2x8x1xf32> to vector<2x8x8xf32>
    %136 = arith.mulf %131, %135 : vector<2x8x8xf32>
    "tpu.trace_start"() <{level = 10 : i32, message = "bts,bsd->btd"}> : () -> ()
    %cst_37 = arith.constant dense<0.000000e+00> : vector<2x8x4xf32>
    %137 = tpu.matmul %136, %125, %cst_37 {dimension_numbers = #tpu.dot_dimension_numbers<[2], [1], [1], [2], [0, 0, 0, 1, 1, 2], [0], [0]>} : vector<2x8x8xf32>, vector<2x8x4xf32>, vector<2x8x4xf32> -> vector<2x8x4xf32>
    "tpu.trace_stop"() : () -> ()
    %138 = vector.shape_cast %137 : vector<2x8x4xf32> to vector<16x4xf32>
    %139 = vector.extract_strided_slice %6 {offsets = [20, 0], sizes = [4, 32], strides = [1, 1]} : vector<32x32xf32> to vector<4x32xf32>
    %cst_38 = arith.constant dense<0.000000e+00> : vector<16x32xf32>
    %140 = tpu.matmul %138, %139, %cst_38 {dimension_numbers = #tpu.dot_dimension_numbers<[1], [0], [0], [1], [0, 0, 1, 1], [], []>} : vector<16x4xf32>, vector<4x32xf32>, vector<16x32xf32> -> vector<16x32xf32>
    %141 = arith.addf %119, %140 : vector<16x32xf32>
    %142 = vector.extract_strided_slice %5 {offsets = [0, 24], sizes = [16, 4], strides = [1, 1]} : vector<16x96xf32> to vector<16x4xf32>
    %143 = vector.shape_cast %142 : vector<16x4xf32> to vector<2x8x4xf32>
    %144 = vector.extract_strided_slice %5 {offsets = [0, 56], sizes = [16, 4], strides = [1, 1]} : vector<16x96xf32> to vector<16x4xf32>
    %145 = vector.shape_cast %144 : vector<16x4xf32> to vector<2x8x4xf32>
    %146 = vector.extract_strided_slice %5 {offsets = [0, 88], sizes = [16, 4], strides = [1, 1]} : vector<16x96xf32> to vector<16x4xf32>
    %147 = vector.shape_cast %146 : vector<16x4xf32> to vector<2x8x4xf32>
    "tpu.trace_start"() <{level = 10 : i32, message = "btd,bsd->bts"}> : () -> ()
    %cst_39 = arith.constant dense<0.000000e+00> : vector<2x8x8xf32>
    %148 = tpu.matmul %143, %145, %cst_39 {dimension_numbers = #tpu.dot_dimension_numbers<[2], [2], [1], [1], [0, 0, 0, 1, 1, 1], [0], [0]>} : vector<2x8x4xf32>, vector<2x8x4xf32>, vector<2x8x8xf32> -> vector<2x8x8xf32>
    "tpu.trace_stop"() : () -> ()
    %cst_40 = arith.constant dense<0xFF800000> : vector<2x8xf32>
    %149 = vector.multi_reduction <maximumf>, %148, %cst_40 [2] : vector<2x8x8xf32> to vector<2x8xf32>
    %150 = vector.shape_cast %149 : vector<2x8xf32> to vector<2x8x1xf32>
    %151 = vector.broadcast %150 : vector<2x8x1xf32> to vector<2x8x8xf32>
    %152 = arith.subf %148, %151 : vector<2x8x8xf32>
    %153 = math.exp %152 : vector<2x8x8xf32>
    %cst_41 = arith.constant dense<0.000000e+00> : vector<2x8xf32>
    %154 = vector.multi_reduction <add>, %153, %cst_41 [2] : vector<2x8x8xf32> to vector<2x8xf32>
    %155 = vector.shape_cast %154 : vector<2x8xf32> to vector<2x8x1xf32>
    %156 = tpu.reciprocal %155 {approx = true} : vector<2x8x1xf32> -> vector<2x8x1xf32>
    %157 = vector.broadcast %156 : vector<2x8x1xf32> to vector<2x8x8xf32>
    %158 = arith.mulf %153, %157 : vector<2x8x8xf32>
    "tpu.trace_start"() <{level = 10 : i32, message = "bts,bsd->btd"}> : () -> ()
    %cst_42 = arith.constant dense<0.000000e+00> : vector<2x8x4xf32>
    %159 = tpu.matmul %158, %147, %cst_42 {dimension_numbers = #tpu.dot_dimension_numbers<[2], [1], [1], [2], [0, 0, 0, 1, 1, 2], [0], [0]>} : vector<2x8x8xf32>, vector<2x8x4xf32>, vector<2x8x4xf32> -> vector<2x8x4xf32>
    "tpu.trace_stop"() : () -> ()
    %160 = vector.shape_cast %159 : vector<2x8x4xf32> to vector<16x4xf32>
    %161 = vector.extract_strided_slice %6 {offsets = [24, 0], sizes = [4, 32], strides = [1, 1]} : vector<32x32xf32> to vector<4x32xf32>
    %cst_43 = arith.constant dense<0.000000e+00> : vector<16x32xf32>
    %162 = tpu.matmul %160, %161, %cst_43 {dimension_numbers = #tpu.dot_dimension_numbers<[1], [0], [0], [1], [0, 0, 1, 1], [], []>} : vector<16x4xf32>, vector<4x32xf32>, vector<16x32xf32> -> vector<16x32xf32>
    %163 = arith.addf %141, %162 : vector<16x32xf32>
    %164 = vector.extract_strided_slice %5 {offsets = [0, 28], sizes = [16, 4], strides = [1, 1]} : vector<16x96xf32> to vector<16x4xf32>
    %165 = vector.shape_cast %164 : vector<16x4xf32> to vector<2x8x4xf32>
    %166 = vector.extract_strided_slice %5 {offsets = [0, 60], sizes = [16, 4], strides = [1, 1]} : vector<16x96xf32> to vector<16x4xf32>
    %167 = vector.shape_cast %166 : vector<16x4xf32> to vector<2x8x4xf32>
    %168 = vector.extract_strided_slice %5 {offsets = [0, 92], sizes = [16, 4], strides = [1, 1]} : vector<16x96xf32> to vector<16x4xf32>
    %169 = vector.shape_cast %168 : vector<16x4xf32> to vector<2x8x4xf32>
    "tpu.trace_start"() <{level = 10 : i32, message = "btd,bsd->bts"}> : () -> ()
    %cst_44 = arith.constant dense<0.000000e+00> : vector<2x8x8xf32>
    %170 = tpu.matmul %165, %167, %cst_44 {dimension_numbers = #tpu.dot_dimension_numbers<[2], [2], [1], [1], [0, 0, 0, 1, 1, 1], [0], [0]>} : vector<2x8x4xf32>, vector<2x8x4xf32>, vector<2x8x8xf32> -> vector<2x8x8xf32>
    "tpu.trace_stop"() : () -> ()
    %cst_45 = arith.constant dense<0xFF800000> : vector<2x8xf32>
    %171 = vector.multi_reduction <maximumf>, %170, %cst_45 [2] : vector<2x8x8xf32> to vector<2x8xf32>
    %172 = vector.shape_cast %171 : vector<2x8xf32> to vector<2x8x1xf32>
    %173 = vector.broadcast %172 : vector<2x8x1xf32> to vector<2x8x8xf32>
    %174 = arith.subf %170, %173 : vector<2x8x8xf32>
    %175 = math.exp %174 : vector<2x8x8xf32>
    %cst_46 = arith.constant dense<0.000000e+00> : vector<2x8xf32>
    %176 = vector.multi_reduction <add>, %175, %cst_46 [2] : vector<2x8x8xf32> to vector<2x8xf32>
    %177 = vector.shape_cast %176 : vector<2x8xf32> to vector<2x8x1xf32>
    %178 = tpu.reciprocal %177 {approx = true} : vector<2x8x1xf32> -> vector<2x8x1xf32>
    %179 = vector.broadcast %178 : vector<2x8x1xf32> to vector<2x8x8xf32>
    %180 = arith.mulf %175, %179 : vector<2x8x8xf32>
    "tpu.trace_start"() <{level = 10 : i32, message = "bts,bsd->btd"}> : () -> ()
    %cst_47 = arith.constant dense<0.000000e+00> : vector<2x8x4xf32>
    %181 = tpu.matmul %180, %169, %cst_47 {dimension_numbers = #tpu.dot_dimension_numbers<[2], [1], [1], [2], [0, 0, 0, 1, 1, 2], [0], [0]>} : vector<2x8x8xf32>, vector<2x8x4xf32>, vector<2x8x4xf32> -> vector<2x8x4xf32>
    "tpu.trace_stop"() : () -> ()
    %182 = vector.shape_cast %181 : vector<2x8x4xf32> to vector<16x4xf32>
    %183 = vector.extract_strided_slice %6 {offsets = [28, 0], sizes = [4, 32], strides = [1, 1]} : vector<32x32xf32> to vector<4x32xf32>
    %cst_48 = arith.constant dense<0.000000e+00> : vector<16x32xf32>
    %184 = tpu.matmul %182, %183, %cst_48 {dimension_numbers = #tpu.dot_dimension_numbers<[1], [0], [0], [1], [0, 0, 1, 1], [], []>} : vector<16x4xf32>, vector<4x32xf32>, vector<16x32xf32> -> vector<16x32xf32>
    %185 = arith.addf %163, %184 : vector<16x32xf32>
    %c0_49 = arith.constant 0 : index
    %c0_50 = arith.constant 0 : index
    %186 = vector.load %arg6[%c0_49, %c0_50] : memref<1x32xf32, #tpu.memory_space<vmem>>, vector<1x32xf32>
    %c0_51 = arith.constant 0 : index
    %c0_52 = arith.constant 0 : index
    %187 = vector.load %arg7[%c0_51, %c0_52] : memref<1x32xf32, #tpu.memory_space<vmem>>, vector<1x32xf32>
    %cst_53 = arith.constant dense<0.000000e+00> : vector<16xf32>
    %188 = vector.multi_reduction <add>, %185, %cst_53 [1] : vector<16x32xf32> to vector<16xf32>
    %189 = vector.shape_cast %188 : vector<16xf32> to vector<16x1xf32>
    %cst_54 = arith.constant 3.200000e+01 : f32
    %190 = vector.broadcast %cst_54 : f32 to vector<16x1xf32>
    %191 = arith.divf %189, %190 : vector<16x1xf32>
    %192 = vector.broadcast %191 : vector<16x1xf32> to vector<16x32xf32>
    %193 = arith.subf %185, %192 : vector<16x32xf32>
    %194 = arith.mulf %193, %193 : vector<16x32xf32>
    %cst_55 = arith.constant dense<0.000000e+00> : vector<16xf32>
    %195 = vector.multi_reduction <add>, %194, %cst_55 [1] : vector<16x32xf32> to vector<16xf32>
    %196 = vector.shape_cast %195 : vector<16xf32> to vector<16x1xf32>
    %cst_56 = arith.constant 3.200000e+01 : f32
    %197 = vector.broadcast %cst_56 : f32 to vector<16x1xf32>
    %198 = arith.divf %196, %197 : vector<16x1xf32>
    %199 = vector.broadcast %191 : vector<16x1xf32> to vector<16x32xf32>
    %200 = arith.subf %185, %199 : vector<16x32xf32>
    %cst_57 = arith.constant 9.99999974E-6 : f32
    %201 = vector.broadcast %cst_57 : f32 to vector<16x1xf32>
    %202 = arith.addf %198, %201 : vector<16x1xf32>
    %203 = math.rsqrt %202 : vector<16x1xf32>
    %204 = vector.broadcast %203 : vector<16x1xf32> to vector<16x32xf32>
    %205 = arith.mulf %200, %204 : vector<16x32xf32>
    %206 = vector.broadcast %186 : vector<1x32xf32> to vector<16x32xf32>
    %207 = arith.mulf %205, %206 : vector<16x32xf32>
    %208 = vector.broadcast %187 : vector<1x32xf32> to vector<16x32xf32>
    %209 = arith.addf %207, %208 : vector<16x32xf32>
    %c0_58 = arith.constant 0 : index
    %c0_59 = arith.constant 0 : index
    %210 = vector.load %arg8[%c0_58, %c0_59] : memref<32x128xf32, #tpu.memory_space<vmem>>, vector<32x128xf32>
    %cst_60 = arith.constant dense<0.000000e+00> : vector<16x128xf32>
    %211 = tpu.matmul %209, %210, %cst_60 {dimension_numbers = #tpu.dot_dimension_numbers<[1], [0], [0], [1], [0, 0, 1, 1], [], []>} : vector<16x32xf32>, vector<32x128xf32>, vector<16x128xf32> -> vector<16x128xf32>
    %c0_61 = arith.constant 0 : index
    %c0_62 = arith.constant 0 : index
    %212 = vector.load %arg9[%c0_61, %c0_62] : memref<1x128xf32, #tpu.memory_space<vmem>>, vector<1x128xf32>
    %213 = vector.broadcast %212 : vector<1x128xf32> to vector<16x128xf32>
    %214 = arith.addf %211, %213 : vector<16x128xf32>
    %cst_63 = arith.constant 0.000000e+00 : f32
    %215 = vector.broadcast %cst_63 : f32 to vector<16x128xf32>
    %216 = arith.maximumf %214, %215 : vector<16x128xf32>
    %c0_64 = arith.constant 0 : index
    %c0_65 = arith.constant 0 : index
    %217 = vector.load %arg10[%c0_64, %c0_65] : memref<128x32xf32, #tpu.memory_space<vmem>>, vector<128x32xf32>
    %cst_66 = arith.constant dense<0.000000e+00> : vector<16x32xf32>
    %218 = tpu.matmul %216, %217, %cst_66 {dimension_numbers = #tpu.dot_dimension_numbers<[1], [0], [0], [1], [0, 0, 1, 1], [], []>} : vector<16x128xf32>, vector<128x32xf32>, vector<16x32xf32> -> vector<16x32xf32>
    %c0_67 = arith.constant 0 : index
    %c0_68 = arith.constant 0 : index
    %219 = vector.load %arg11[%c0_67, %c0_68] : memref<1x32xf32, #tpu.memory_space<vmem>>, vector<1x32xf32>
    %220 = vector.broadcast %219 : vector<1x32xf32> to vector<16x32xf32>
    %221 = arith.addf %218, %220 : vector<16x32xf32>
    %cst_69 = arith.constant 0.000000e+00 : f32
    %222 = vector.broadcast %cst_69 : f32 to vector<16x32xf32>
    %223 = arith.maximumf %221, %222 : vector<16x32xf32>
    %224 = arith.addf %223, %209 : vector<16x32xf32>
    %c0_70 = arith.constant 0 : index
    %c0_71 = arith.constant 0 : index
    %225 = vector.load %arg12[%c0_70, %c0_71] : memref<1x32xf32, #tpu.memory_space<vmem>>, vector<1x32xf32>
    %c0_72 = arith.constant 0 : index
    %c0_73 = arith.constant 0 : index
    %226 = vector.load %arg13[%c0_72, %c0_73] : memref<1x32xf32, #tpu.memory_space<vmem>>, vector<1x32xf32>
    %cst_74 = arith.constant dense<0.000000e+00> : vector<16xf32>
    %227 = vector.multi_reduction <add>, %224, %cst_74 [1] : vector<16x32xf32> to vector<16xf32>
    %228 = vector.shape_cast %227 : vector<16xf32> to vector<16x1xf32>
    %cst_75 = arith.constant 3.200000e+01 : f32
    %229 = vector.broadcast %cst_75 : f32 to vector<16x1xf32>
    %230 = arith.divf %228, %229 : vector<16x1xf32>
    %231 = vector.broadcast %230 : vector<16x1xf32> to vector<16x32xf32>
    %232 = arith.subf %224, %231 : vector<16x32xf32>
    %233 = arith.mulf %232, %232 : vector<16x32xf32>
    %cst_76 = arith.constant dense<0.000000e+00> : vector<16xf32>
    %234 = vector.multi_reduction <add>, %233, %cst_76 [1] : vector<16x32xf32> to vector<16xf32>
    %235 = vector.shape_cast %234 : vector<16xf32> to vector<16x1xf32>
    %cst_77 = arith.constant 3.200000e+01 : f32
    %236 = vector.broadcast %cst_77 : f32 to vector<16x1xf32>
    %237 = arith.divf %235, %236 : vector<16x1xf32>
    %238 = vector.broadcast %230 : vector<16x1xf32> to vector<16x32xf32>
    %239 = arith.subf %224, %238 : vector<16x32xf32>
    %cst_78 = arith.constant 9.99999974E-6 : f32
    %240 = vector.broadcast %cst_78 : f32 to vector<16x1xf32>
    %241 = arith.addf %237, %240 : vector<16x1xf32>
    %242 = math.rsqrt %241 : vector<16x1xf32>
    %243 = vector.broadcast %242 : vector<16x1xf32> to vector<16x32xf32>
    %244 = arith.mulf %239, %243 : vector<16x32xf32>
    %245 = vector.broadcast %225 : vector<1x32xf32> to vector<16x32xf32>
    %246 = arith.mulf %244, %245 : vector<16x32xf32>
    %247 = vector.broadcast %226 : vector<1x32xf32> to vector<16x32xf32>
    %248 = arith.addf %246, %247 : vector<16x32xf32>
    %c0_79 = arith.constant 0 : index
    %c0_80 = arith.constant 0 : index
    %249 = vector.load %arg14[%c0_79, %c0_80] : memref<16x32xf32, #tpu.memory_space<vmem>>, vector<16x32xf32>
    tpu.vector_store %arg14[%c0_79, %c0_80], %248 {strides = array<i32>} : memref<16x32xf32, #tpu.memory_space<vmem>>, vector<16x32xf32>,
    return
  }
  func.func @transform_0(%arg0: i32) -> (i32, i32) {
    %c0_i32 = arith.constant 0 : i32
    %c0_i32_0 = arith.constant 0 : i32
    %c0_i32_1 = arith.constant 0 : i32
    return %c0_i32, %c0_i32_0 : i32, i32
  }
  func.func @transform_1(%arg0: i32) -> (i32, i32) {
    %c0_i32 = arith.constant 0 : i32
    %c0_i32_0 = arith.constant 0 : i32
    %c0_i32_1 = arith.constant 0 : i32
    return %c0_i32, %c0_i32_0 : i32, i32
  }
  func.func @transform_2(%arg0: i32) -> (i32, i32) {
    %c0_i32 = arith.constant 0 : i32
    %c0_i32_0 = arith.constant 0 : i32
    %c0_i32_1 = arith.constant 0 : i32
    return %c0_i32, %c0_i32_0 : i32, i32
  }
  func.func @transform_3(%arg0: i32) -> (i32, i32) {
    %c0_i32 = arith.constant 0 : i32
    %c0_i32_0 = arith.constant 0 : i32
    %c0_i32_1 = arith.constant 0 : i32
    return %c0_i32, %c0_i32_0 : i32, i32
  }
  func.func @transform_4(%arg0: i32) -> (i32, i32) {
    %c0_i32 = arith.constant 0 : i32
    %c0_i32_0 = arith.constant 0 : i32
    %c0_i32_1 = arith.constant 0 : i32
    return %c0_i32, %c0_i32_0 : i32, i32
  }
  func.func @transform_5(%arg0: i32) -> (i32, i32) {
    %c0_i32 = arith.constant 0 : i32
    %c0_i32_0 = arith.constant 0 : i32
    %c0_i32_1 = arith.constant 0 : i32
    return %c0_i32, %c0_i32_0 : i32, i32
  }
  func.func @transform_6(%arg0: i32) -> (i32, i32) {
    %c0_i32 = arith.constant 0 : i32
    %c0_i32_0 = arith.constant 0 : i32
    %c0_i32_1 = arith.constant 0 : i32
    return %c0_i32, %c0_i32_0 : i32, i32
  }
  func.func @transform_7(%arg0: i32) -> (i32, i32) {
    %c0_i32 = arith.constant 0 : i32
    %c0_i32_0 = arith.constant 0 : i32
    %c0_i32_1 = arith.constant 0 : i32
    return %c0_i32, %c0_i32_0 : i32, i32
  }
  func.func @transform_8(%arg0: i32) -> (i32, i32) {
    %c0_i32 = arith.constant 0 : i32
    %c0_i32_0 = arith.constant 0 : i32
    %c0_i32_1 = arith.constant 0 : i32
    return %c0_i32, %c0_i32_0 : i32, i32
  }
  func.func @transform_9(%arg0: i32) -> (i32, i32) {
    %c0_i32 = arith.constant 0 : i32
    %c0_i32_0 = arith.constant 0 : i32
    %c0_i32_1 = arith.constant 0 : i32
    return %c0_i32, %c0_i32_0 : i32, i32
  }
  func.func @transform_10(%arg0: i32) -> (i32, i32) {
    %c0_i32 = arith.constant 0 : i32
    %c0_i32_0 = arith.constant 0 : i32
    %c0_i32_1 = arith.constant 0 : i32
    return %c0_i32, %c0_i32_0 : i32, i32
  }
  func.func @transform_11(%arg0: i32) -> (i32, i32) {
    %c0_i32 = arith.constant 0 : i32
    %c0_i32_0 = arith.constant 0 : i32
    %c0_i32_1 = arith.constant 0 : i32
    return %c0_i32, %c0_i32_0 : i32, i32
  }
  func.func @transform_12(%arg0: i32) -> (i32, i32) {
    %c0_i32 = arith.constant 0 : i32
    %c0_i32_0 = arith.constant 0 : i32
    %c0_i32_1 = arith.constant 0 : i32
    return %c0_i32, %c0_i32_0 : i32, i32
  }
  func.func @transform_13(%arg0: i32) -> (i32, i32) {
    %c0_i32 = arith.constant 0 : i32
    %c0_i32_0 = arith.constant 0 : i32
    %c0_i32_1 = arith.constant 0 : i32
    return %c0_i32, %c0_i32_0 : i32, i32
  }
}

</mosaic_0001>

<bundles_post_ra>
// kernel: tpu_custom_call.1
= control target key start
LH: loop header
LB: loop body
LE: loop exit
PB: predicated region body
PF: predicated region fallthrough
CT: control target
= control target key end

     0   :  { %vm58_vm0 = vcmask 261120   ;;  %s4933_s0 = inlined_call_operand.vmem [shape: f32[16,32], index: 0, kind: input, shape index: {}]   ;;  %s4934_s1 = inlined_call_operand.vmem [shape: f32[32,96], index: 1, kind: input, shape index: {}]   ;;  %s4935_s2 = inlined_call_operand.vmem [shape: f32[1,96], index: 2, kind: input, shape index: {}]   ;;  %s4936_s3 = inlined_call_operand.vmem [shape: f32[32,32], index: 3, kind: input, shape index: {}]   ;;  %s4937_s4 = inlined_call_operand.vmem [shape: f32[1,32], index: 4, kind: input, shape index: {}]   ;;  %s4938_s5 = inlined_call_operand.vmem [shape: f32[1,32], index: 5, kind: input, shape index: {}]   ;;  %s4939_s6 = inlined_call_operand.vmem [shape: f32[1,32], index: 6, kind: input, shape index: {}]   ;;  %s4940_s7 = inlined_call_operand.vmem [shape: f32[32,128], index: 7, kind: input, shape index: {}]   ;;  %s4941_s8 = inlined_call_operand.vmem [shape: f32[1,128], index: 8, kind: input, shape index: {}]   ;;  %s4942_s9 = inlined_call_operand.vmem [shape: f32[128,32], index: 9, kind: input, shape index: {}]   ;;  %s4943_s10 = inlined_call_operand.vmem [shape: f32[1,32], index: 10, kind: input, shape index: {}]   ;;  %s4944_s11 = inlined_call_operand.vmem [shape: f32[1,32], index: 11, kind: input, shape index: {}]   ;;  %s4945_s12 = inlined_call_operand.vmem [shape: f32[1,32], index: 12, kind: input, shape index: {}]   ;;  %s4946_s13 = inlined_call_operand.hbm [shape: f32[16,32], index: 13, kind: output, shape index: {}]  }
   0x1   :  { %v50_v0 = vld [vmem:[%s4934_s1 + $0x18] sm:$0xff]  ;;  %v49_v1 = vld [vmem:[%s4934_s1 + $0x10] sm:$0xff]  ;;  %v4473_v2 = vld [vmem:[%s4933_s0] sm:$0xff] }
   0x2   :  { %3987 = vmatprep.subr.mxu0 %v50_v0  ;;  %v48_v3 = vld [vmem:[%s4934_s1 + $0x8] sm:$0xff]  ;;  %3995 = vmatprep.mubr.msk.f32.mxu0 %vm58_vm0, %v4473_v2 }
   0x3   :  { %3988 = vmatpush3.msra.mxu0 %v50_v0 }
   0x4   :  { %18 = vsyncpa [#allocation3], 0  ;;  %3989 = vmatprep.subr.mxu0 %v49_v1  ;;  %v47_v4 = vld [vmem:[%s4934_s1] sm:$0xff]  ;;  %v4486_v5 = vld [vmem:[%s4933_s0 + $0x8] sm:$0xff]  ;;  %v4366_v6 = vmov 0.0   ;;  %vm4367_vm1 = vmmov 0  }
   0x5   :  { %3990 = vmatpush3.msra.mxu0 %v49_v1  ;;  %4023 = vmatprep.subr.mxu1 %v4366_v6  ;;  %v3785_v8 = vld [vmem:[%s4935_s2] ss:$0 sm:$0xff]  ;;  %s4368_s20 = smov 96   ;;  %vm156_vm2 = vcmask 31744   ;;  %vm308_vm3 = vcmask 64512   ;;  %s4369_s2 = smov 64  }
   0x6   :  { %3991 = vmatprep.subr.mxu0 %v48_v3  ;;  %4025 = vmatprep.mubr.msk.f32.mxu1 %vm4367_vm1, %v4366_v6  ;;  %s4370_s21 = smov 124   ;;  %s4371_s22 = smov 92   ;;  %v4540_v40 = vld [vmem:[%s4936_s3] sm:$0xff]  ;;  %vm489_vm4 = vcmask 1043456  }
   0x7   :  { %3992 = vmatpush3.msra.mxu0 %v48_v3  ;;  %v4561_v55 = vld [vmem:[%s4937_s4] ss:$0 sm:$0xff]  ;;  %s4372_s27 = smov 60   ;;  %s4373_s28 = smov 120  }
   0x8   :  { %3993 = vmatprep.subr.mxu0 %v47_v4  ;;  %v151_v56 = vadd.f32 %v4561_v55, %v4473_v2  ;;  %s4374_s4 = smov 88   ;;  %s4375_s29 = smov 56  }
   0x9   :  { %3994 = vmatpush3.msra.mxu0 %v47_v4  ;;  %s4376_s30 = smov 84   ;;  %s4377_s14 = smov 116  }
   0xa   :  { %3996 = vmatmul.mubr.msk.f32.vlgmr.msra.gmra.mxu0 %vm58_vm0, %v4486_v5  ;;  %3998 = vmatprep.subr.mxu0 %v4366_v6  ;;  %s4378_s17 = smov 52   ;;  %s4379_s18 = smov 80  }
   0xb   :  { %4000 = vmatprep.mubr.msk.f32.mxu0 %vm4367_vm1, %v4366_v6  ;;  %s4380_s19 = smov 112   ;;  %s4381_s0 = smov 48  }
   0xc   :  { %s4382_s1 = smov 76   ;;  %s4385_s23 = smov 72  }
   0xd   :  { %s4386_s24 = smov 104   ;;  %s4387_s25 = smov 40  }
   0xe   :  { %s4388_s26 = smov 68  }
  0xca   :  { %v3997_v7 = vpop.f32.mrf.mxu0 }
  0xcb   :  { %v4502_v11 = vadd.f32 %v3997_v7, %v3785_v8 }
  0xcc   :  { %v131_v9 = vpop.f32.mrf.mxu0 }
  0xcd   :  { %v4499_v10 = vadd.f32 %v3785_v8, %v131_v9 }
  0xcf   :  { %154 = vrot.lane.b32.xlu0 %v4499_v10, %s4368_s20 }
  0xd3   :  { %232 = vrot.lane.b32.xlu0 %v4502_v11, %s4368_s20  ;;  %s4383_s20 = smov 108  }
 0x141   :  { %v155_v12 = vpop.permute.xlu0 %154 }
 0x142   :  { %3999 = vmatpush3.xpose.msk.msra.mxu0 %vm156_vm2, %v155_v12  ;;  %v900_v12 = vrot.slane %v4540_v40, 4 }
 0x143   :  { %4003 = vmatprep.subr.mxu0 %v4366_v6 }
 0x145   :  { %4001 = vmatmul.mubr.msk.f32.vlgmr.msra.gmra.mxu0 %vm156_vm2, %v4499_v10  ;;  %v233_v13 = vpop.permute.xlu0 %232 }
 0x146   :  { %4004 = vmatpush3.xpose.msk.msra.mxu0 %vm156_vm2, %v233_v13  ;;  %4005 = vmatprep.mubr.msk.f32.mxu0 %vm4367_vm1, %v4366_v6 }
 0x147   :  { %4008 = vmatprep.subr.mxu0 %v4366_v6 }
 0x149   :  { %4006 = vmatmul.mubr.msk.f32.vlgmr.msra.gmra.mxu0 %vm156_vm2, %v4502_v11 }
 0x14a   :  { %4010 = vmatprep.mubr.msk.f32.mxu0 %vm4367_vm1, %v4366_v6 }
 0x205   :  { %v227_v14 = vpop.f32.mrf.mxu0 }
 0x206   :  { %v309_v15 = vsel %vm308_vm3, %v227_v14, -inf }
 0x207   :  { %310 = vmax.xlane.f32.xlu1 %v309_v15  ;;  %v4002_v16 = vpop.f32.mrf.mxu0 }
 0x209   :  { %v304_v17 = vpop.f32.mrf.mxu0 }
 0x20a   :  { %v312_v18 = vsel %vm308_vm3, %v304_v17, -inf }
 0x20b   :  { %313 = vmax.xlane.f32.xlu1 %v312_v18  ;;  %v4007_v19 = vpop.f32.mrf.mxu0 }
 0x21c   :  { %331 = vrot.lane.b32.xlu1 %v4499_v10, %s4369_s2 }
 0x290   :  { %v311_v20 = vpop.xlane.xlu1 %310 }
 0x291   :  { %v315_v21 = vsub.f32 %v227_v14, %v311_v20 }
 0x293   :  { %v317_v22 = vmul.f32 1.442695, %v315_v21 }
 0x294   :  { %v314_v23 = vpop.xlane.xlu1 %313 }
 0x295   :  { %4272 = vpow2.f32 %v317_v22  ;;  %v316_v24 = vsub.f32 %v304_v17, %v314_v23 }
 0x297   :  { %v319_v25 = vmul.f32 1.442695, %v316_v24 }
 0x298   :  { %v332_v26 = vpop.permute.xlu1 %331 }
 0x299   :  { %4274 = vpow2.f32 %v319_v25  ;;  %4009 = vmatpush3.msra.mxu0 %v332_v26 }
 0x29a   :  { %4013 = vmatprep.subr.mxu0 %v4366_v6 }
 0x2a2   :  { %v4273_v27 = vpop.eup %4272 }
 0x2a3   :  { %v321_v28 = vsel %vm308_vm3, %v4273_v27, 0.0 }
 0x2a4   :  { %322 = vadd.xlane.f32.xlu0 %v321_v28 }
 0x2a6   :  { %v4275_v29 = vpop.eup %4274 }
 0x2a7   :  { %v324_v30 = vsel %vm308_vm3, %v4275_v29, 0.0 }
 0x2a8   :  { %325 = vadd.xlane.f32.xlu1 %v324_v30 }
 0x2b9   :  { %407 = vrot.lane.b32.xlu1 %v4502_v11, %s4369_s2 }
 0x2ba   :  { %570 = vrot.lane.b32.xlu0 %v4499_v10, %s4370_s21 }
 0x2bd   :  { %572 = vrot.lane.b32.xlu1 %v4499_v10, %s4371_s22 }
 0x2c1   :  { %650 = vrot.lane.b32.xlu1 %v4502_v11, %s4371_s22  ;;  %s4384_s22 = smov 44  }
 0x2c5   :  { %648 = vrot.lane.b32.xlu1 %v4502_v11, %s4370_s21 }
 0x32d   :  { %v323_v31 = vpop.xlane.xlu0 %322 }
 0x32e   :  { %4276 = vrcp.f32 %v323_v31 }
 0x331   :  { %v326_v32 = vpop.xlane.xlu1 %325  ;;  %v571_v36 = vpop.permute.xlu0 %570 }
 0x332   :  { %4278 = vrcp.f32 %v326_v32 }
 0x335   :  { %v408_v33 = vpop.permute.xlu1 %407 }
 0x339   :  { %v573_v34 = vpop.permute.xlu1 %572 }
 0x33a   :  { %4024 = vmatpush3.xpose.msk.msra.mxu1 %vm156_vm2, %v573_v34 }
 0x33b   :  { %v4277_v35 = vpop.eup %4276  ;;  %4033 = vmatprep.subr.mxu1 %v4366_v6 }
 0x33c   :  { %v329_v37 = vmul.f32 %v4277_v35, %v4273_v27 }
 0x33d   :  { %4026 = vmatmul.mubr.msk.f32.vlgmr.msra.gmra.mxu1 %vm156_vm2, %v571_v36  ;;  %v651_v45 = vpop.permute.xlu1 %650 }
 0x33e   :  { %4011 = vmatmul.mubr.msk.f32.vlgmr.msra.gmra.mxu0 %vm308_vm3, %v329_v37  ;;  %4035 = vmatprep.mubr.msk.f32.mxu1 %vm4367_vm1, %v4366_v6 }
 0x33f   :  { %v4279_v38 = vpop.eup %4278  ;;  %4014 = vmatpush3.msra.mxu0 %v408_v33  ;;  %4015 = vmatprep.mubr.msk.f32.mxu0 %vm4367_vm1, %v4366_v6  ;;  %v152_v33 = vadd.f32 %v4561_v55, %v4486_v5 }
 0x340   :  { %v330_v39 = vmul.f32 %v4279_v38, %v4275_v29  ;;  %4018 = vmatprep.subr.msk.mxu0 %vm489_vm4, %v4540_v40 }
 0x341   :  { %v649_v49 = vpop.permute.xlu1 %648 }
 0x342   :  { %4016 = vmatmul.mubr.msk.f32.vlgmr.msra.gmra.mxu0 %vm308_vm3, %v330_v39 }
 0x343   :  { %4019 = vmatpush3.msk.msra.mxu0 %vm489_vm4, %v4540_v40 }
 0x344   :  { %4028 = vmatprep.subr.mxu0 %v4366_v6 }
 0x3fd   :  { %v644_v41 = vpop.f32.mrf.mxu1 }
 0x3fe   :  { %v403_v42 = vpop.f32.mrf.mxu0  ;;  %v726_v43 = vsel %vm308_vm3, %v644_v41, -inf }
 0x3ff   :  { %4020 = vmatprep.mubr.msk.f32.mxu0 %vm156_vm2, %v403_v42  ;;  %727 = vmax.xlane.f32.xlu1 %v726_v43  ;;  %v4027_v44 = vpop.f32.mrf.mxu1 }
 0x400   :  { %v4012_v46 = vpop.f32.mrf.mxu0 }
 0x402   :  { %v479_v47 = vpop.f32.mrf.mxu0 }
 0x403   :  { %4021 = vmatmul.mubr.msk.f32.vlgmr.msra.gmra.mxu0 %vm156_vm2, %v479_v47 }
 0x404   :  { %4029 = vmatpush3.xpose.msk.msra.mxu0 %vm156_vm2, %v651_v45  ;;  %v4017_v48 = vpop.f32.mrf.mxu0  ;;  %4030 = vmatprep.mubr.msk.f32.mxu0 %vm4367_vm1, %v4366_v6 }
 0x405   :  { %4038 = vmatprep.subr.mxu0 %v4366_v6 }
 0x407   :  { %4031 = vmatmul.mubr.msk.f32.vlgmr.msra.gmra.mxu0 %vm156_vm2, %v649_v49 }
 0x408   :  { %4040 = vmatprep.mubr.msk.f32.mxu0 %vm4367_vm1, %v4366_v6 }
 0x488   :  { %v728_v50 = vpop.xlane.xlu1 %727 }
 0x489   :  { %v732_v51 = vsub.f32 %v644_v41, %v728_v50  ;;  %v4622_v50 = vld [vmem:[%s4936_s3 + $0x8] sm:$0xff] }
 0x48b   :  { %v734_v52 = vmul.f32 1.442695, %v732_v51 }
 0x48d   :  { %4280 = vpow2.f32 %v734_v52 }
 0x49a   :  { %v4281_v53 = vpop.eup %4280 }
 0x49b   :  { %v738_v54 = vsel %vm308_vm3, %v4281_v53, 0.0 }
 0x49c   :  { %739 = vadd.xlane.f32.xlu1 %v738_v54 }
 0x4c3   :  { %v4565_v57 = vpop.f32.mrf.mxu0 }
 0x4c4   :  { %v569_v34 = vadd.f32 %v4565_v57, %v152_v33 }
 0x4c5   :  { %v559_v58 = vpop.f32.mrf.mxu0 }
 0x4c6   :  { %v4567_v59 = vadd.f32 %v559_v58, %v151_v56 }
 0x4c7   :  { %v722_v60 = vpop.f32.mrf.mxu0 }
 0x4c8   :  { %v729_v61 = vsel %vm308_vm3, %v722_v60, -inf }
 0x4c9   :  { %730 = vmax.xlane.f32.xlu0 %v729_v61  ;;  %v4032_v62 = vpop.f32.mrf.mxu0 }
 0x4df   :  { %824 = vrot.lane.b32.xlu0 %v4502_v11, %s4372_s27 }
 0x4e3   :  { %986 = vrot.lane.b32.xlu0 %v4499_v10, %s4373_s28 }
 0x525   :  { %v740_v7 = vpop.xlane.xlu1 %739 }
 0x552   :  { %v731_v63 = vpop.xlane.xlu0 %730 }
 0x553   :  { %v733_v0 = vsub.f32 %v722_v60, %v731_v63 }
 0x555   :  { %v736_v1 = vmul.f32 1.442695, %v733_v0 }
 0x556   :  { %v825_v2 = vpop.permute.xlu0 %824 }
 0x557   :  { %4282 = vpow2.f32 %v736_v1  ;;  %4039 = vmatpush3.msra.mxu0 %v825_v2 }
 0x558   :  { %4048 = vmatprep.subr.mxu0 %v4366_v6  ;;  %4284 = vrcp.f32 %v740_v7 }
 0x55a   :  { %v987_v18 = vpop.permute.xlu0 %986 }
 0x564   :  { %v4283_v3 = vpop.eup %4282 }
 0x565   :  { %v741_v4 = vsel %vm308_vm3, %v4283_v3, 0.0  ;;  %v4285_v9 = vpop.eup %4284 }
 0x566   :  { %742 = vadd.xlane.f32.xlu1 %v741_v4  ;;  %v746_v14 = vmul.f32 %v4285_v9, %v4281_v53 }
 0x577   :  { %748 = vrot.lane.b32.xlu1 %v4499_v10, %s4372_s27  ;;  %s4389_s27 = smov 100  }
 0x57b   :  { %988 = vrot.lane.b32.xlu1 %v4499_v10, %s4374_s4 }
 0x57f   :  { %1066 = vrot.lane.b32.xlu1 %v4502_v11, %s4374_s4 }
 0x583   :  { %1064 = vrot.lane.b32.xlu1 %v4502_v11, %s4373_s28 }
 0x5ef   :  { %v743_v8 = vpop.xlane.xlu1 %742 }
 0x5f0   :  { %4286 = vrcp.f32 %v743_v8 }
 0x5f3   :  { %v749_v13 = vpop.permute.xlu1 %748 }
 0x5f4   :  { %4034 = vmatpush3.msra.mxu1 %v749_v13 }
 0x5f5   :  { %4036 = vmatmul.mubr.msk.f32.vlgmr.msra.gmra.mxu1 %vm308_vm3, %v746_v14  ;;  %4043 = vmatprep.subr.msk.mxu1 %vm489_vm4, %v900_v12 }
 0x5f6   :  { %4044 = vmatpush3.msk.msra.mxu1 %vm489_vm4, %v900_v12 }
 0x5f7   :  { %4053 = vmatprep.subr.mxu1 %v4366_v6  ;;  %v989_v17 = vpop.permute.xlu1 %988 }
 0x5fb   :  { %v1067_v21 = vpop.permute.xlu1 %1066 }
 0x5fd   :  { %v4287_v15 = vpop.eup %4286 }
 0x5fe   :  { %v747_v16 = vmul.f32 %v4287_v15, %v4283_v3 }
 0x5ff   :  { %v1065_v24 = vpop.permute.xlu1 %1064 }
 0x600   :  { %4041 = vmatmul.mubr.msk.f32.vlgmr.msra.gmra.mxu0 %vm308_vm3, %v747_v16 }
 0x601   :  { %4049 = vmatpush3.xpose.msk.msra.mxu0 %vm156_vm2, %v989_v17  ;;  %4050 = vmatprep.mubr.msk.f32.mxu0 %vm4367_vm1, %v4366_v6 }
 0x602   :  { %4058 = vmatprep.subr.mxu0 %v4366_v6 }
 0x604   :  { %4051 = vmatmul.mubr.msk.f32.vlgmr.msra.gmra.mxu0 %vm156_vm2, %v987_v18 }
 0x605   :  { %4060 = vmatprep.mubr.msk.f32.mxu0 %vm4367_vm1, %v4366_v6 }
 0x6b5   :  { %v820_v19 = vpop.f32.mrf.mxu1 }
 0x6b6   :  { %4045 = vmatprep.mubr.msk.f32.mxu1 %vm156_vm2, %v820_v19 }
 0x6b7   :  { %v4037_v20 = vpop.f32.mrf.mxu1 }
 0x6c0   :  { %v896_v22 = vpop.f32.mrf.mxu0 }
 0x6c1   :  { %4046 = vmatmul.mubr.msk.f32.vlgmr.msra.gmra.mxu1 %vm156_vm2, %v896_v22  ;;  %v1732_v22 = vrot.slane %v4622_v50, 4 }
 0x6c2   :  { %4054 = vmatpush3.xpose.msk.msra.mxu1 %vm156_vm2, %v1067_v21  ;;  %v4042_v23 = vpop.f32.mrf.mxu0  ;;  %4055 = vmatprep.mubr.msk.f32.mxu1 %vm4367_vm1, %v4366_v6 }
 0x6c3   :  { %4063 = vmatprep.subr.mxu1 %v4366_v6 }
 0x6c4   :  { %v1060_v25 = vpop.f32.mrf.mxu0 }
 0x6c5   :  { %4056 = vmatmul.mubr.msk.f32.vlgmr.msra.gmra.mxu1 %vm156_vm2, %v1065_v24  ;;  %v1142_v26 = vsel %vm308_vm3, %v1060_v25, -inf }
 0x6c6   :  { %1143 = vmax.xlane.f32.xlu0 %v1142_v26  ;;  %v4052_v27 = vpop.f32.mrf.mxu0  ;;  %4065 = vmatprep.mubr.msk.f32.mxu1 %vm4367_vm1, %v4366_v6 }
 0x74f   :  { %v1144_v28 = vpop.xlane.xlu0 %1143 }
 0x750   :  { %v1148_v29 = vsub.f32 %v1060_v25, %v1144_v28 }
 0x752   :  { %v1150_v30 = vmul.f32 1.442695, %v1148_v29 }
 0x754   :  { %4288 = vpow2.f32 %v1150_v30 }
 0x761   :  { %v4289_v31 = vpop.eup %4288 }
 0x762   :  { %v1154_v32 = vsel %vm308_vm3, %v4289_v31, 0.0 }
 0x763   :  { %1155 = vadd.xlane.f32.xlu0 %v1154_v32 }
 0x781   :  { %v4047_v35 = vpop.f32.mrf.mxu1 }
 0x782   :  { %v4605_v36 = vadd.f32 %v4047_v35, %v569_v34 }
 0x783   :  { %v975_v37 = vpop.f32.mrf.mxu1 }
 0x784   :  { %v4608_v38 = vadd.f32 %v975_v37, %v4567_v59 }
 0x785   :  { %v1138_v39 = vpop.f32.mrf.mxu1 }
 0x786   :  { %v1145_v40 = vsel %vm308_vm3, %v1138_v39, -inf }
 0x787   :  { %1146 = vmax.xlane.f32.xlu1 %v1145_v40  ;;  %v4057_v41 = vpop.f32.mrf.mxu1 }
 0x798   :  { %1164 = vrot.lane.b32.xlu1 %v4499_v10, %s4375_s29 }
 0x79c   :  { %1404 = vrot.lane.b32.xlu1 %v4499_v10, %s4376_s30 }
 0x7a0   :  { %1482 = vrot.lane.b32.xlu1 %v4502_v11, %s4376_s30  ;;  %s4391_s30 = smov [#allocation2]  }
 0x7a4   :  { %1480 = vrot.lane.b32.xlu1 %v4502_v11, %s4377_s14 }
 0x7ec   :  { %v1156_v5 = vpop.xlane.xlu0 %1155 }
 0x7ed   :  { %4290 = vrcp.f32 %v1156_v5 }
 0x7fa   :  { %v4291_v43 = vpop.eup %4290 }
 0x7fb   :  { %v1162_v47 = vmul.f32 %v4291_v43, %v4289_v31 }
 0x810   :  { %v1147_v42 = vpop.xlane.xlu1 %1146 }
 0x811   :  { %v1149_v44 = vsub.f32 %v1138_v39, %v1147_v42 }
 0x813   :  { %v1152_v45 = vmul.f32 1.442695, %v1149_v44 }
 0x814   :  { %v1165_v46 = vpop.permute.xlu1 %1164 }
 0x815   :  { %4292 = vpow2.f32 %v1152_v45  ;;  %4059 = vmatpush3.msra.mxu0 %v1165_v46 }
 0x816   :  { %4061 = vmatmul.mubr.msk.f32.vlgmr.msra.gmra.mxu0 %vm308_vm3, %v1162_v47  ;;  %4068 = vmatprep.subr.msk.mxu0 %vm489_vm4, %v4622_v50 }
 0x817   :  { %4069 = vmatpush3.msk.msra.mxu0 %vm489_vm4, %v4622_v50 }
 0x818   :  { %4078 = vmatprep.subr.mxu0 %v4366_v6  ;;  %v1405_v55 = vpop.permute.xlu1 %1404 }
 0x81c   :  { %v1483_v59 = vpop.permute.xlu1 %1482 }
 0x820   :  { %v1481_v62 = vpop.permute.xlu1 %1480 }
 0x822   :  { %v4293_v48 = vpop.eup %4292 }
 0x823   :  { %v1157_v49 = vsel %vm308_vm3, %v4293_v48, 0.0 }
 0x824   :  { %1158 = vadd.xlane.f32.xlu0 %v1157_v49 }
 0x83a   :  { %1240 = vrot.lane.b32.xlu0 %v4502_v11, %s4375_s29 }
 0x83e   :  { %1402 = vrot.lane.b32.xlu0 %v4499_v10, %s4377_s14  ;;  %s3774_s14 = sshll.u32 %s4391_s30, 4  ;;  %s3775_s14 = int_to_ptr.vmem [resolvable:$true] %s3774_s14 }
 0x83f   :  { %s4344_s15 = scalar_lea.vmem %s3775_s14, 256  ;;  %p4349_p1 = scmp.lt.s32.totalorder %s3775_s14, %s3775_s14 }
 0x840   :  { %p4345_p0 = scmp.ne.s32.totalorder %s3775_s14, %s4344_s15  ;;  %p4350_p2 = scmp.lt.s32.totalorder %s4344_s15, %s4344_s15 }
 0x842   :  { %p4351_p3 = por %p4350_p2, %p4349_p1 }
 0x844   :  { %p4352_p4 = pnand %p4351_p3, %p4345_p0 }
 0x8ad   :  { %v1159_v51 = vpop.xlane.xlu0 %1158 }
 0x8ae   :  { %4294 = vrcp.f32 %v1159_v51 }
 0x8b1   :  { %v1241_v52 = vpop.permute.xlu0 %1240 }
 0x8b2   :  { %4064 = vmatpush3.msra.mxu1 %v1241_v52 }
 0x8b3   :  { %4073 = vmatprep.subr.mxu1 %v4366_v6 }
 0x8b5   :  { %v1403_v56 = vpop.permute.xlu0 %1402 }
 0x8bb   :  { %v4295_v53 = vpop.eup %4294 }
 0x8bc   :  { %v1163_v54 = vmul.f32 %v4295_v53, %v4293_v48 }
 0x8be   :  { %4066 = vmatmul.mubr.msk.f32.vlgmr.msra.gmra.mxu1 %vm308_vm3, %v1163_v54 }
 0x8bf   :  { %4074 = vmatpush3.xpose.msk.msra.mxu1 %vm156_vm2, %v1405_v55  ;;  %4075 = vmatprep.mubr.msk.f32.mxu1 %vm4367_vm1, %v4366_v6 }
 0x8c0   :  { %4083 = vmatprep.subr.mxu1 %v4366_v6 }
 0x8c2   :  { %4076 = vmatmul.mubr.msk.f32.vlgmr.msra.gmra.mxu1 %vm156_vm2, %v1403_v56 }
 0x8c3   :  { %4085 = vmatprep.mubr.msk.f32.mxu1 %vm4367_vm1, %v4366_v6 }
 0x8d6   :  { %v1236_v57 = vpop.f32.mrf.mxu0 }
 0x8d7   :  { %4070 = vmatprep.mubr.msk.f32.mxu0 %vm156_vm2, %v1236_v57 }
 0x8d8   :  { %v4062_v58 = vpop.f32.mrf.mxu0 }
 0x97e   :  { %v1312_v60 = vpop.f32.mrf.mxu1 }
 0x97f   :  { %4071 = vmatmul.mubr.msk.f32.vlgmr.msra.gmra.mxu0 %vm156_vm2, %v1312_v60 }
 0x980   :  { %4079 = vmatpush3.xpose.msk.msra.mxu0 %vm156_vm2, %v1483_v59  ;;  %v4067_v61 = vpop.f32.mrf.mxu1  ;;  %4080 = vmatprep.mubr.msk.f32.mxu0 %vm4367_vm1, %v4366_v6 }
 0x981   :  { %4088 = vmatprep.subr.mxu0 %v4366_v6 }
 0x982   :  { %v1476_v63 = vpop.f32.mrf.mxu1 }
 0x983   :  { %4081 = vmatmul.mubr.msk.f32.vlgmr.msra.gmra.mxu0 %vm156_vm2, %v1481_v62  ;;  %v1558_v0 = vsel %vm308_vm3, %v1476_v63, -inf }
 0x984   :  { %1559 = vmax.xlane.f32.xlu0 %v1558_v0  ;;  %v4077_v1 = vpop.f32.mrf.mxu1  ;;  %4090 = vmatprep.mubr.msk.f32.mxu0 %vm4367_vm1, %v4366_v6 }
 0xa0d   :  { %v1560_v2 = vpop.xlane.xlu0 %1559 }
 0xa0e   :  { %v1564_v3 = vsub.f32 %v1476_v63, %v1560_v2  ;;  %v4706_v63 = vld [vmem:[%s4936_s3 + $0x10] sm:$0xff] }
 0xa10   :  { %v1566_v4 = vmul.f32 1.442695, %v1564_v3 }
 0xa12   :  { %4296 = vpow2.f32 %v1566_v4 }
 0xa1f   :  { %v4297_v7 = vpop.eup %4296 }
 0xa20   :  { %v1570_v8 = vsel %vm308_vm3, %v4297_v7, 0.0 }
 0xa21   :  { %1571 = vadd.xlane.f32.xlu0 %v1570_v8 }
 0xa3f   :  { %v4072_v9 = vpop.f32.mrf.mxu0 }
 0xa40   :  { %v4650_v12 = vadd.f32 %v4072_v9, %v4605_v36 }
 0xa41   :  { %v1391_v13 = vpop.f32.mrf.mxu0 }
 0xa42   :  { %v4653_v14 = vadd.f32 %v1391_v13, %v4608_v38 }
 0xa43   :  { %v1554_v15 = vpop.f32.mrf.mxu0 }
 0xa44   :  { %v1561_v16 = vsel %vm308_vm3, %v1554_v15, -inf }
 0xa45   :  { %1562 = vmax.xlane.f32.xlu1 %v1561_v16  ;;  %v4082_v17 = vpop.f32.mrf.mxu0 }
 0xa56   :  { %1580 = vrot.lane.b32.xlu1 %v4499_v10, %s4378_s17 }
 0xa5a   :  { %1820 = vrot.lane.b32.xlu1 %v4499_v10, %s4379_s18 }
 0xa5e   :  { %1898 = vrot.lane.b32.xlu1 %v4502_v11, %s4379_s18 }
 0xa62   :  { %1896 = vrot.lane.b32.xlu1 %v4502_v11, %s4380_s19 }
 0xaaa   :  { %v1572_v18 = vpop.xlane.xlu0 %1571 }
 0xaab   :  { %4298 = vrcp.f32 %v1572_v18 }
 0xab8   :  { %v4299_v20 = vpop.eup %4298 }
 0xab9   :  { %v1578_v25 = vmul.f32 %v4299_v20, %v4297_v7 }
 0xace   :  { %v1563_v19 = vpop.xlane.xlu1 %1562 }
 0xacf   :  { %v1565_v21 = vsub.f32 %v1554_v15, %v1563_v19 }
 0xad1   :  { %v1568_v23 = vmul.f32 1.442695, %v1565_v21 }
 0xad2   :  { %v1581_v24 = vpop.permute.xlu1 %1580 }
 0xad3   :  { %4300 = vpow2.f32 %v1568_v23  ;;  %4084 = vmatpush3.msra.mxu1 %v1581_v24 }
 0xad4   :  { %4086 = vmatmul.mubr.msk.f32.vlgmr.msra.gmra.mxu1 %vm308_vm3, %v1578_v25  ;;  %4093 = vmatprep.subr.msk.mxu1 %vm489_vm4, %v1732_v22 }
 0xad5   :  { %4094 = vmatpush3.msk.msra.mxu1 %vm489_vm4, %v1732_v22 }
 0xad6   :  { %4103 = vmatprep.subr.mxu1 %v4366_v6  ;;  %v1821_v32 = vpop.permute.xlu1 %1820 }
 0xada   :  { %v1899_v36 = vpop.permute.xlu1 %1898 }
 0xade   :  { %v1897_v39 = vpop.permute.xlu1 %1896 }
 0xae0   :  { %v4301_v26 = vpop.eup %4300 }
 0xae1   :  { %v1573_v27 = vsel %vm308_vm3, %v4301_v26, 0.0 }
 0xae2   :  { %1574 = vadd.xlane.f32.xlu0 %v1573_v27 }
 0xaf8   :  { %1656 = vrot.lane.b32.xlu0 %v4502_v11, %s4378_s17 }
 0xafc   :  { %1818 = vrot.lane.b32.xlu0 %v4499_v10, %s4380_s19 }
 0xb6b   :  { %v1575_v28 = vpop.xlane.xlu0 %1574 }
 0xb6c   :  { %4302 = vrcp.f32 %v1575_v28 }
 0xb6f   :  { %v1657_v29 = vpop.permute.xlu0 %1656 }
 0xb70   :  { %4089 = vmatpush3.msra.mxu0 %v1657_v29 }
 0xb71   :  { %4098 = vmatprep.subr.mxu0 %v4366_v6 }
 0xb73   :  { %v1819_v33 = vpop.permute.xlu0 %1818 }
 0xb79   :  { %v4303_v30 = vpop.eup %4302 }
 0xb7a   :  { %v1579_v31 = vmul.f32 %v4303_v30, %v4301_v26 }
 0xb7c   :  { %4091 = vmatmul.mubr.msk.f32.vlgmr.msra.gmra.mxu0 %vm308_vm3, %v1579_v31 }
 0xb7d   :  { %4099 = vmatpush3.xpose.msk.msra.mxu0 %vm156_vm2, %v1821_v32  ;;  %4100 = vmatprep.mubr.msk.f32.mxu0 %vm4367_vm1, %v4366_v6 }
 0xb7e   :  { %4108 = vmatprep.subr.mxu0 %v4366_v6 }
 0xb80   :  { %4101 = vmatmul.mubr.msk.f32.vlgmr.msra.gmra.mxu0 %vm156_vm2, %v1819_v33 }
 0xb81   :  { %4110 = vmatprep.mubr.msk.f32.mxu0 %vm4367_vm1, %v4366_v6 }
 0xb94   :  { %v1652_v34 = vpop.f32.mrf.mxu1 }
 0xb95   :  { %4095 = vmatprep.mubr.msk.f32.mxu1 %vm156_vm2, %v1652_v34 }
 0xb96   :  { %v4087_v35 = vpop.f32.mrf.mxu1 }
 0xb97   :  { %v2564_v35 = vrot.slane %v4706_v63, 4 }
 0xc3c   :  { %v1728_v37 = vpop.f32.mrf.mxu0 }
 0xc3d   :  { %4096 = vmatmul.mubr.msk.f32.vlgmr.msra.gmra.mxu1 %vm156_vm2, %v1728_v37 }
 0xc3e   :  { %4104 = vmatpush3.xpose.msk.msra.mxu1 %vm156_vm2, %v1899_v36  ;;  %v4092_v38 = vpop.f32.mrf.mxu0  ;;  %4105 = vmatprep.mubr.msk.f32.mxu1 %vm4367_vm1, %v4366_v6 }
 0xc3f   :  { %4113 = vmatprep.subr.mxu1 %v4366_v6 }
 0xc40   :  { %v1892_v40 = vpop.f32.mrf.mxu0 }
 0xc41   :  { %4106 = vmatmul.mubr.msk.f32.vlgmr.msra.gmra.mxu1 %vm156_vm2, %v1897_v39  ;;  %v1974_v41 = vsel %vm308_vm3, %v1892_v40, -inf }
 0xc42   :  { %1975 = vmax.xlane.f32.xlu0 %v1974_v41  ;;  %v4102_v5 = vpop.f32.mrf.mxu0  ;;  %4115 = vmatprep.mubr.msk.f32.mxu1 %vm4367_vm1, %v4366_v6 }
 0xccb   :  { %v1976_v42 = vpop.xlane.xlu0 %1975 }
 0xccc   :  { %v1980_v43 = vsub.f32 %v1892_v40, %v1976_v42 }
 0xcce   :  { %v1982_v44 = vmul.f32 1.442695, %v1980_v43 }
 0xcd0   :  { %4304 = vpow2.f32 %v1982_v44 }
 0xcdd   :  { %v4305_v45 = vpop.eup %4304 }
 0xcde   :  { %v1986_v46 = vsel %vm308_vm3, %v4305_v45, 0.0 }
 0xcdf   :  { %1987 = vadd.xlane.f32.xlu0 %v1986_v46 }
 0xcfd   :  { %v4097_v47 = vpop.f32.mrf.mxu1 }
 0xcfe   :  { %v4689_v48 = vadd.f32 %v4097_v47, %v4650_v12 }
 0xcff   :  { %v1807_v49 = vpop.f32.mrf.mxu1 }
 0xd00   :  { %v4692_v50 = vadd.f32 %v1807_v49, %v4653_v14 }
 0xd01   :  { %v1970_v51 = vpop.f32.mrf.mxu1 }
 0xd02   :  { %v1977_v52 = vsel %vm308_vm3, %v1970_v51, -inf }
 0xd03   :  { %1978 = vmax.xlane.f32.xlu1 %v1977_v52  ;;  %v4107_v53 = vpop.f32.mrf.mxu1 }
 0xd14   :  { %1996 = vrot.lane.b32.xlu1 %v4499_v10, %s4381_s0 }
 0xd18   :  { %2236 = vrot.lane.b32.xlu1 %v4499_v10, %s4382_s1 }
 0xd1c   :  { %2314 = vrot.lane.b32.xlu1 %v4502_v11, %s4382_s1 }
 0xd20   :  { %2312 = vrot.lane.b32.xlu1 %v4502_v11, %s4383_s20 }
 0xd68   :  { %v1988_v54 = vpop.xlane.xlu0 %1987 }
 0xd69   :  { %4306 = vrcp.f32 %v1988_v54 }
 0xd76   :  { %v4307_v56 = vpop.eup %4306 }
 0xd77   :  { %v1994_v60 = vmul.f32 %v4307_v56, %v4305_v45 }
 0xd8c   :  { %v1979_v55 = vpop.xlane.xlu1 %1978 }
 0xd8d   :  { %v1981_v57 = vsub.f32 %v1970_v51, %v1979_v55 }
 0xd8f   :  { %v1984_v58 = vmul.f32 1.442695, %v1981_v57 }
 0xd90   :  { %v1997_v59 = vpop.permute.xlu1 %1996 }
 0xd91   :  { %4308 = vpow2.f32 %v1984_v58  ;;  %4109 = vmatpush3.msra.mxu0 %v1997_v59 }
 0xd92   :  { %4111 = vmatmul.mubr.msk.f32.vlgmr.msra.gmra.mxu0 %vm308_vm3, %v1994_v60  ;;  %4118 = vmatprep.subr.msk.mxu0 %vm489_vm4, %v4706_v63 }
 0xd93   :  { %4119 = vmatpush3.msk.msra.mxu0 %vm489_vm4, %v4706_v63 }
 0xd94   :  { %4128 = vmatprep.subr.mxu0 %v4366_v6  ;;  %v2237_v4 = vpop.permute.xlu1 %2236 }
 0xd98   :  { %v2315_v12 = vpop.permute.xlu1 %2314 }
 0xd9c   :  { %v2313_v15 = vpop.permute.xlu1 %2312 }
 0xd9e   :  { %v4309_v61 = vpop.eup %4308 }
 0xd9f   :  { %v1989_v62 = vsel %vm308_vm3, %v4309_v61, 0.0 }
 0xda0   :  { %1990 = vadd.xlane.f32.xlu0 %v1989_v62 }
 0xdb6   :  { %2072 = vrot.lane.b32.xlu0 %v4502_v11, %s4381_s0 }
 0xdba   :  { %2234 = vrot.lane.b32.xlu0 %v4499_v10, %s4383_s20 }
 0xe29   :  { %v1991_v0 = vpop.xlane.xlu0 %1990 }
 0xe2a   :  { %4310 = vrcp.f32 %v1991_v0 }
 0xe2d   :  { %v2073_v1 = vpop.permute.xlu0 %2072 }
 0xe2e   :  { %4114 = vmatpush3.msra.mxu1 %v2073_v1 }
 0xe2f   :  { %4123 = vmatprep.subr.mxu1 %v4366_v6 }
 0xe31   :  { %v2235_v7 = vpop.permute.xlu0 %2234 }
 0xe37   :  { %v4311_v2 = vpop.eup %4310 }
 0xe38   :  { %v1995_v3 = vmul.f32 %v4311_v2, %v4309_v61 }
 0xe3a   :  { %4116 = vmatmul.mubr.msk.f32.vlgmr.msra.gmra.mxu1 %vm308_vm3, %v1995_v3 }
 0xe3b   :  { %4124 = vmatpush3.xpose.msk.msra.mxu1 %vm156_vm2, %v2237_v4  ;;  %4125 = vmatprep.mubr.msk.f32.mxu1 %vm4367_vm1, %v4366_v6 }
 0xe3c   :  { %4133 = vmatprep.subr.mxu1 %v4366_v6 }
 0xe3e   :  { %4126 = vmatmul.mubr.msk.f32.vlgmr.msra.gmra.mxu1 %vm156_vm2, %v2235_v7 }
 0xe3f   :  { %4135 = vmatprep.mubr.msk.f32.mxu1 %vm4367_vm1, %v4366_v6 }
 0xe52   :  { %v2068_v8 = vpop.f32.mrf.mxu0 }
 0xe53   :  { %4120 = vmatprep.mubr.msk.f32.mxu0 %vm156_vm2, %v2068_v8 }
 0xe54   :  { %v4112_v9 = vpop.f32.mrf.mxu0 }
 0xefa   :  { %v2144_v13 = vpop.f32.mrf.mxu1 }
 0xefb   :  { %4121 = vmatmul.mubr.msk.f32.vlgmr.msra.gmra.mxu0 %vm156_vm2, %v2144_v13 }
 0xefc   :  { %4129 = vmatpush3.xpose.msk.msra.mxu0 %vm156_vm2, %v2315_v12  ;;  %v4117_v14 = vpop.f32.mrf.mxu1  ;;  %4130 = vmatprep.mubr.msk.f32.mxu0 %vm4367_vm1, %v4366_v6 }
 0xefd   :  { %4138 = vmatprep.subr.mxu0 %v4366_v6 }
 0xefe   :  { %v2308_v16 = vpop.f32.mrf.mxu1 }
 0xeff   :  { %4131 = vmatmul.mubr.msk.f32.vlgmr.msra.gmra.mxu0 %vm156_vm2, %v2313_v15  ;;  %v2390_v17 = vsel %vm308_vm3, %v2308_v16, -inf }
 0xf00   :  { %2391 = vmax.xlane.f32.xlu0 %v2390_v17  ;;  %v4127_v18 = vpop.f32.mrf.mxu1  ;;  %4140 = vmatprep.mubr.msk.f32.mxu0 %vm4367_vm1, %v4366_v6 }
 0xf89   :  { %v2392_v19 = vpop.xlane.xlu0 %2391 }
 0xf8a   :  { %v2396_v20 = vsub.f32 %v2308_v16, %v2392_v19  ;;  %v4790_v16 = vld [vmem:[%s4936_s3 + $0x18] sm:$0xff]  ;;  %s4390_s3 = smov 36  }
 0xf8c   :  { %v2398_v21 = vmul.f32 1.442695, %v2396_v20 }
 0xf8e   :  { %4312 = vpow2.f32 %v2398_v21 }
 0xf9b   :  { %v4313_v22 = vpop.eup %4312 }
 0xf9c   :  { %v2402_v23 = vsel %vm308_vm3, %v4313_v22, 0.0 }
 0xf9d   :  { %2403 = vadd.xlane.f32.xlu0 %v2402_v23 }
 0xfbb   :  { %v4122_v24 = vpop.f32.mrf.mxu0 }
 0xfbc   :  { %v4734_v25 = vadd.f32 %v4122_v24, %v4689_v48 }
 0xfbd   :  { %v2223_v26 = vpop.f32.mrf.mxu0 }
 0xfbe   :  { %v4737_v27 = vadd.f32 %v2223_v26, %v4692_v50 }
 0xfbf   :  { %v2386_v28 = vpop.f32.mrf.mxu0 }
 0xfc0   :  { %v2393_v29 = vsel %vm308_vm3, %v2386_v28, -inf }
 0xfc1   :  { %2394 = vmax.xlane.f32.xlu1 %v2393_v29  ;;  %v4132_v30 = vpop.f32.mrf.mxu0 }
 0xfd2   :  { %2412 = vrot.lane.b32.xlu1 %v4499_v10, %s4384_s22 }
 0xfd6   :  { %2652 = vrot.lane.b32.xlu1 %v4499_v10, %s4385_s23 }
 0xfda   :  { %2730 = vrot.lane.b32.xlu1 %v4502_v11, %s4385_s23 }
 0xfde   :  { %2728 = vrot.lane.b32.xlu1 %v4502_v11, %s4386_s24 }
0x1026   :  { %v2404_v31 = vpop.xlane.xlu0 %2403 }
0x1027   :  { %4314 = vrcp.f32 %v2404_v31 }
0x1034   :  { %v4315_v33 = vpop.eup %4314 }
0x1035   :  { %v2410_v38 = vmul.f32 %v4315_v33, %v4313_v22 }
0x104a   :  { %v2395_v32 = vpop.xlane.xlu1 %2394 }
0x104b   :  { %v2397_v34 = vsub.f32 %v2386_v28, %v2395_v32 }
0x104d   :  { %v2400_v36 = vmul.f32 1.442695, %v2397_v34 }
0x104e   :  { %v2413_v37 = vpop.permute.xlu1 %2412 }
0x104f   :  { %4316 = vpow2.f32 %v2400_v36  ;;  %4134 = vmatpush3.msra.mxu1 %v2413_v37 }
0x1050   :  { %4136 = vmatmul.mubr.msk.f32.vlgmr.msra.gmra.mxu1 %vm308_vm3, %v2410_v38  ;;  %4143 = vmatprep.subr.msk.mxu1 %vm489_vm4, %v2564_v35 }
0x1051   :  { %4144 = vmatpush3.msk.msra.mxu1 %vm489_vm4, %v2564_v35 }
0x1052   :  { %4153 = vmatprep.subr.mxu1 %v4366_v6  ;;  %v2653_v44 = vpop.permute.xlu1 %2652 }
0x1056   :  { %v2731_v48 = vpop.permute.xlu1 %2730 }
0x105a   :  { %v2729_v51 = vpop.permute.xlu1 %2728 }
0x105c   :  { %v4317_v39 = vpop.eup %4316 }
0x105d   :  { %v2405_v40 = vsel %vm308_vm3, %v4317_v39, 0.0 }
0x105e   :  { %2406 = vadd.xlane.f32.xlu0 %v2405_v40 }
0x1074   :  { %2488 = vrot.lane.b32.xlu0 %v4502_v11, %s4384_s22 }
0x1078   :  { %2650 = vrot.lane.b32.xlu0 %v4499_v10, %s4386_s24 }
0x10e7   :  { %v2407_v41 = vpop.xlane.xlu0 %2406 }
0x10e8   :  { %4318 = vrcp.f32 %v2407_v41 }
0x10eb   :  { %v2489_v5 = vpop.permute.xlu0 %2488 }
0x10ec   :  { %4139 = vmatpush3.msra.mxu0 %v2489_v5 }
0x10ed   :  { %4148 = vmatprep.subr.mxu0 %v4366_v6 }
0x10ef   :  { %v2651_v45 = vpop.permute.xlu0 %2650 }
0x10f5   :  { %v4319_v42 = vpop.eup %4318 }
0x10f6   :  { %v2411_v43 = vmul.f32 %v4319_v42, %v4317_v39 }
0x10f8   :  { %4141 = vmatmul.mubr.msk.f32.vlgmr.msra.gmra.mxu0 %vm308_vm3, %v2411_v43 }
0x10f9   :  { %4149 = vmatpush3.xpose.msk.msra.mxu0 %vm156_vm2, %v2653_v44  ;;  %4150 = vmatprep.mubr.msk.f32.mxu0 %vm4367_vm1, %v4366_v6 }
0x10fa   :  { %4158 = vmatprep.subr.mxu0 %v4366_v6 }
0x10fc   :  { %4151 = vmatmul.mubr.msk.f32.vlgmr.msra.gmra.mxu0 %vm156_vm2, %v2651_v45 }
0x10fd   :  { %4160 = vmatprep.mubr.msk.f32.mxu0 %vm4367_vm1, %v4366_v6 }
0x1110   :  { %v2484_v46 = vpop.f32.mrf.mxu1 }
0x1111   :  { %4145 = vmatprep.mubr.msk.f32.mxu1 %vm156_vm2, %v2484_v46  ;;  %v3396_v46 = vrot.slane %v4790_v16, 4 }
0x1112   :  { %v4137_v47 = vpop.f32.mrf.mxu1 }
0x11b8   :  { %v2560_v49 = vpop.f32.mrf.mxu0 }
0x11b9   :  { %4146 = vmatmul.mubr.msk.f32.vlgmr.msra.gmra.mxu1 %vm156_vm2, %v2560_v49 }
0x11ba   :  { %4154 = vmatpush3.xpose.msk.msra.mxu1 %vm156_vm2, %v2731_v48  ;;  %v4142_v50 = vpop.f32.mrf.mxu0  ;;  %4155 = vmatprep.mubr.msk.f32.mxu1 %vm4367_vm1, %v4366_v6 }
0x11bb   :  { %4163 = vmatprep.subr.mxu1 %v4366_v6 }
0x11bc   :  { %v2724_v52 = vpop.f32.mrf.mxu0 }
0x11bd   :  { %4156 = vmatmul.mubr.msk.f32.vlgmr.msra.gmra.mxu1 %vm156_vm2, %v2729_v51  ;;  %v2806_v53 = vsel %vm308_vm3, %v2724_v52, -inf }
0x11be   :  { %2807 = vmax.xlane.f32.xlu0 %v2806_v53  ;;  %v4152_v54 = vpop.f32.mrf.mxu0  ;;  %4165 = vmatprep.mubr.msk.f32.mxu1 %vm4367_vm1, %v4366_v6 }
0x1247   :  { %v2808_v55 = vpop.xlane.xlu0 %2807 }
0x1248   :  { %v2812_v56 = vsub.f32 %v2724_v52, %v2808_v55 }
0x124a   :  { %v2814_v57 = vmul.f32 1.442695, %v2812_v56 }
0x124c   :  { %4320 = vpow2.f32 %v2814_v57 }
0x1259   :  { %v4321_v58 = vpop.eup %4320 }
0x125a   :  { %v2818_v59 = vsel %vm308_vm3, %v4321_v58, 0.0 }
0x125b   :  { %2819 = vadd.xlane.f32.xlu0 %v2818_v59 }
0x1279   :  { %v4147_v60 = vpop.f32.mrf.mxu1 }
0x127a   :  { %v4773_v61 = vadd.f32 %v4147_v60, %v4734_v25 }
0x127b   :  { %v2639_v62 = vpop.f32.mrf.mxu1 }
0x127c   :  { %v4776_v63 = vadd.f32 %v2639_v62, %v4737_v27 }
0x127d   :  { %v2802_v0 = vpop.f32.mrf.mxu1 }
0x127e   :  { %v2809_v1 = vsel %vm308_vm3, %v2802_v0, -inf }
0x127f   :  { %2810 = vmax.xlane.f32.xlu1 %v2809_v1  ;;  %v4157_v2 = vpop.f32.mrf.mxu1 }
0x1290   :  { %2828 = vrot.lane.b32.xlu1 %v4499_v10, %s4387_s25 }
0x1294   :  { %3068 = vrot.lane.b32.xlu1 %v4499_v10, %s4388_s26 }
0x1298   :  { %3146 = vrot.lane.b32.xlu1 %v4502_v11, %s4388_s26 }
0x129c   :  { %3144 = vrot.lane.b32.xlu1 %v4502_v11, %s4389_s27 }
0x12e4   :  { %v2820_v3 = vpop.xlane.xlu0 %2819 }
0x12e5   :  { %4322 = vrcp.f32 %v2820_v3 }
0x12f2   :  { %v4323_v7 = vpop.eup %4322 }
0x12f3   :  { %v2826_v13 = vmul.f32 %v4323_v7, %v4321_v58 }
0x1308   :  { %v2811_v4 = vpop.xlane.xlu1 %2810 }
0x1309   :  { %v2813_v8 = vsub.f32 %v2802_v0, %v2811_v4 }
0x130b   :  { %v2816_v9 = vmul.f32 1.442695, %v2813_v8 }
0x130c   :  { %v2829_v12 = vpop.permute.xlu1 %2828 }
0x130d   :  { %4324 = vpow2.f32 %v2816_v9  ;;  %4159 = vmatpush3.msra.mxu0 %v2829_v12 }
0x130e   :  { %4161 = vmatmul.mubr.msk.f32.vlgmr.msra.gmra.mxu0 %vm308_vm3, %v2826_v13  ;;  %4168 = vmatprep.subr.msk.mxu0 %vm489_vm4, %v4790_v16 }
0x130f   :  { %4169 = vmatpush3.msk.msra.mxu0 %vm489_vm4, %v4790_v16  ;;  %v3528_v16 = vld [vmem:[%s4940_s7 + $0x8] sm:$0xff] }
0x1310   :  { %4178 = vmatprep.subr.mxu0 %v4366_v6  ;;  %v3069_v21 = vpop.permute.xlu1 %3068 }
0x1314   :  { %v3147_v25 = vpop.permute.xlu1 %3146 }
0x1318   :  { %v3145_v28 = vpop.permute.xlu1 %3144 }
0x131a   :  { %v4325_v14 = vpop.eup %4324 }
0x131b   :  { %v2821_v15 = vsel %vm308_vm3, %v4325_v14, 0.0 }
0x131c   :  { %2822 = vadd.xlane.f32.xlu0 %v2821_v15  ;;  %v3529_v15 = vld [vmem:[%s4940_s7 + $0x10] sm:$0xff] }
0x1332   :  { %2904 = vrot.lane.b32.xlu0 %v4502_v11, %s4387_s25 }
0x1336   :  { %3066 = vrot.lane.b32.xlu0 %v4499_v10, %s4389_s27 }
0x13a5   :  { %v2823_v17 = vpop.xlane.xlu0 %2822 }
0x13a6   :  { %4326 = vrcp.f32 %v2823_v17  ;;  %v3527_v17 = vld [vmem:[%s4940_s7] sm:$0xff] }
0x13a9   :  { %v2905_v18 = vpop.permute.xlu0 %2904 }
0x13aa   :  { %4164 = vmatpush3.msra.mxu1 %v2905_v18  ;;  %v3636_v18 = vld [vmem:[%s4942_s9 + $0x78] sm:$0xff] }
0x13ab   :  { %4173 = vmatprep.subr.mxu1 %v4366_v6 }
0x13ad   :  { %v3067_v22 = vpop.permute.xlu0 %3066 }
0x13b3   :  { %v4327_v19 = vpop.eup %4326 }
0x13b4   :  { %v2827_v20 = vmul.f32 %v4327_v19, %v4325_v14  ;;  %v3530_v14 = vld [vmem:[%s4940_s7 + $0x18] sm:$0xff]  ;;  %v3635_v19 = vld [vmem:[%s4942_s9 + $0x70] sm:$0xff] }
0x13b6   :  { %4166 = vmatmul.mubr.msk.f32.vlgmr.msra.gmra.mxu1 %vm308_vm3, %v2827_v20  ;;  %v3634_v20 = vld [vmem:[%s4942_s9 + $0x68] sm:$0xff] }
0x13b7   :  { %4174 = vmatpush3.xpose.msk.msra.mxu1 %vm156_vm2, %v3069_v21  ;;  %4175 = vmatprep.mubr.msk.f32.mxu1 %vm4367_vm1, %v4366_v6  ;;  %v3633_v21 = vld [vmem:[%s4942_s9 + $0x60] sm:$0xff] }
0x13b8   :  { %4183 = vmatprep.subr.mxu1 %v4366_v6 }
0x13ba   :  { %4176 = vmatmul.mubr.msk.f32.vlgmr.msra.gmra.mxu1 %vm156_vm2, %v3067_v22  ;;  %v3632_v22 = vld [vmem:[%s4942_s9 + $0x58] sm:$0xff] }
0x13bb   :  { %4185 = vmatprep.mubr.msk.f32.mxu1 %vm4367_vm1, %v4366_v6 }
0x13ce   :  { %v2900_v23 = vpop.f32.mrf.mxu0 }
0x13cf   :  { %4170 = vmatprep.mubr.msk.f32.mxu0 %vm156_vm2, %v2900_v23  ;;  %v3631_v23 = vld [vmem:[%s4942_s9 + $0x50] sm:$0xff] }
0x13d0   :  { %v4162_v24 = vpop.f32.mrf.mxu0 }
0x13d1   :  { %v3630_v24 = vld [vmem:[%s4942_s9 + $0x48] sm:$0xff] }
0x1476   :  { %v2976_v26 = vpop.f32.mrf.mxu1 }
0x1477   :  { %4171 = vmatmul.mubr.msk.f32.vlgmr.msra.gmra.mxu0 %vm156_vm2, %v2976_v26  ;;  %v3628_v26 = vld [vmem:[%s4942_s9 + $0x38] sm:$0xff] }
0x1478   :  { %4179 = vmatpush3.xpose.msk.msra.mxu0 %vm156_vm2, %v3147_v25  ;;  %v4167_v27 = vpop.f32.mrf.mxu1  ;;  %4180 = vmatprep.mubr.msk.f32.mxu0 %vm4367_vm1, %v4366_v6  ;;  %v3629_v25 = vld [vmem:[%s4942_s9 + $0x40] sm:$0xff] }
0x1479   :  { %4188 = vmatprep.subr.mxu0 %v4366_v6  ;;  %v3627_v27 = vld [vmem:[%s4942_s9 + $0x30] sm:$0xff] }
0x147a   :  { %v3140_v29 = vpop.f32.mrf.mxu1 }
0x147b   :  { %4181 = vmatmul.mubr.msk.f32.vlgmr.msra.gmra.mxu0 %vm156_vm2, %v3145_v28  ;;  %v3222_v30 = vsel %vm308_vm3, %v3140_v29, -inf  ;;  %v3626_v28 = vld [vmem:[%s4942_s9 + $0x28] sm:$0xff] }
0x147c   :  { %3223 = vmax.xlane.f32.xlu0 %v3222_v30  ;;  %v4177_v31 = vpop.f32.mrf.mxu1  ;;  %4190 = vmatprep.mubr.msk.f32.mxu0 %vm4367_vm1, %v4366_v6 }
0x1505   :  { %v3224_v32 = vpop.xlane.xlu0 %3223 }
0x1506   :  { %v3228_v33 = vsub.f32 %v3140_v29, %v3224_v32  ;;  %v3625_v29 = vld [vmem:[%s4942_s9 + $0x20] sm:$0xff] }
0x1508   :  { %v3230_v34 = vmul.f32 1.442695, %v3228_v33 }
0x150a   :  { %4328 = vpow2.f32 %v3230_v34 }
0x1517   :  { %v4329_v35 = vpop.eup %4328 }
0x1518   :  { %v3234_v36 = vsel %vm308_vm3, %v4329_v35, 0.0 }
0x1519   :  { %3235 = vadd.xlane.f32.xlu0 %v3234_v36 }
0x1537   :  { %v4172_v37 = vpop.f32.mrf.mxu0 }
0x1538   :  { %v3065_v38 = vadd.f32 %v4172_v37, %v4773_v61  ;;  %v3861_v37 = vld [vmem:[%s4938_s5] ss:$0 sm:$0xff] }
0x1539   :  { %v3055_v39 = vpop.f32.mrf.mxu0 }
0x153a   :  { %v3064_v40 = vadd.f32 %v3055_v39, %v4776_v63 }
0x153b   :  { %v3218_v41 = vpop.f32.mrf.mxu0 }
0x153c   :  { %v3225_v5 = vsel %vm308_vm3, %v3218_v41, -inf }
0x153d   :  { %3226 = vmax.xlane.f32.xlu1 %v3225_v5  ;;  %v4182_v42 = vpop.f32.mrf.mxu0  ;;  %v3862_v5 = vld [vmem:[%s4939_s6] ss:$0 sm:$0xff] }
0x154e   :  { %3244 = vrot.lane.b32.xlu1 %v4499_v10, %s4390_s3 }
0x15a2   :  { %v3236_v6 = vpop.xlane.xlu0 %3235 }
0x15a3   :  { %4330 = vrcp.f32 %v3236_v6 }
0x15b0   :  { %v4331_v44 = vpop.eup %4330 }
0x15b1   :  { %v3242_v49 = vmul.f32 %v4331_v44, %v4329_v35  ;;  %v3624_v44 = vld [vmem:[%s4942_s9 + $0x18] sm:$0xff] }
0x15c6   :  { %v3227_v43 = vpop.xlane.xlu1 %3226 }
0x15c7   :  { %v3229_v45 = vsub.f32 %v3218_v41, %v3227_v43 }
0x15c9   :  { %v3232_v47 = vmul.f32 1.442695, %v3229_v45  ;;  %v3623_v45 = vld [vmem:[%s4942_s9 + $0x10] sm:$0xff] }
0x15ca   :  { %v3245_v48 = vpop.permute.xlu1 %3244 }
0x15cb   :  { %4332 = vpow2.f32 %v3232_v47  ;;  %4184 = vmatpush3.msra.mxu1 %v3245_v48  ;;  %v3621_v47 = vld [vmem:[%s4942_s9] sm:$0xff] }
0x15cc   :  { %4186 = vmatmul.mubr.msk.f32.vlgmr.msra.gmra.mxu1 %vm308_vm3, %v3242_v49  ;;  %4193 = vmatprep.subr.msk.mxu1 %vm489_vm4, %v3396_v46  ;;  %v3863_v48 = vld [vmem:[%s4941_s8] ss:$0 sm:$0xff] }
0x15cd   :  { %4194 = vmatpush3.msk.msra.mxu1 %vm489_vm4, %v3396_v46  ;;  %v3622_v46 = vld [vmem:[%s4942_s9 + $0x8] sm:$0xff] }
0x15ce   :  { %4209 = vmatprep.subr.mxu1 %v3636_v18 }
0x15d8   :  { %v4333_v50 = vpop.eup %4332 }
0x15d9   :  { %v3237_v10 = vsel %vm308_vm3, %v4333_v50, 0.0 }
0x15da   :  { %3238 = vadd.xlane.f32.xlu0 %v3237_v10 }
0x15f0   :  { %3320 = vrot.lane.b32.xlu0 %v4502_v11, %s4390_s3 }
0x1663   :  { %v3239_v51 = vpop.xlane.xlu0 %3238 }
0x1664   :  { %4334 = vrcp.f32 %v3239_v51 }
0x1667   :  { %v3321_v52 = vpop.permute.xlu0 %3320 }
0x1668   :  { %4189 = vmatpush3.msra.mxu0 %v3321_v52 }
0x1669   :  { %4198 = vmatprep.subr.mxu0 %v3530_v14 }
0x1671   :  { %v4335_v53 = vpop.eup %4334 }
0x1672   :  { %v3243_v54 = vmul.f32 %v4335_v53, %v4333_v50 }
0x1674   :  { %4191 = vmatmul.mubr.msk.f32.vlgmr.msra.gmra.mxu0 %vm308_vm3, %v3243_v54  ;;  %v3866_v54 = vld [vmem:[%s4943_s10] ss:$0 sm:$0xff] }
0x1675   :  { %4199 = vmatpush3.msra.mxu0 %v3530_v14 }
0x1676   :  { %4200 = vmatprep.subr.mxu0 %v3529_v15 }
0x1677   :  { %4201 = vmatpush3.msra.mxu0 %v3529_v15 }
0x1678   :  { %4202 = vmatprep.subr.mxu0 %v3528_v16 }
0x1679   :  { %4203 = vmatpush3.msra.mxu0 %v3528_v16 }
0x167a   :  { %4204 = vmatprep.subr.mxu0 %v3527_v17 }
0x167b   :  { %4205 = vmatpush3.msra.mxu0 %v3527_v17 }
0x168c   :  { %v3316_v55 = vpop.f32.mrf.mxu1 }
0x168d   :  { %4195 = vmatprep.mubr.msk.f32.mxu1 %vm156_vm2, %v3316_v55 }
0x168e   :  { %v4187_v56 = vpop.f32.mrf.mxu1 }
0x1734   :  { %v3392_v57 = vpop.f32.mrf.mxu0 }
0x1735   :  { %4196 = vmatmul.mubr.msk.f32.vlgmr.msra.gmra.mxu1 %vm156_vm2, %v3392_v57 }
0x1736   :  { %v4192_v58 = vpop.f32.mrf.mxu0  ;;  %4210 = vmatpush3.msra.mxu1 %v3636_v18 }
0x1737   :  { %4211 = vmatprep.subr.mxu1 %v3635_v19 }
0x1738   :  { %4212 = vmatpush3.msra.mxu1 %v3635_v19 }
0x1739   :  { %4213 = vmatprep.subr.mxu1 %v3634_v20 }
0x173a   :  { %4214 = vmatpush3.msra.mxu1 %v3634_v20 }
0x173b   :  { %4215 = vmatprep.subr.mxu1 %v3633_v21 }
0x173c   :  { %4216 = vmatpush3.msra.mxu1 %v3633_v21  ;;  %v3867_v21 = vld [vmem:[%s4944_s11] ss:$0 sm:$0xff] }
0x173d   :  { %4217 = vmatprep.subr.mxu1 %v3632_v22 }
0x173e   :  { %4218 = vmatpush3.msra.mxu1 %v3632_v22 }
0x173f   :  { %4219 = vmatprep.subr.mxu1 %v3631_v23 }
0x1740   :  { %4220 = vmatpush3.msra.mxu1 %v3631_v23 }
0x1741   :  { %4221 = vmatprep.subr.mxu1 %v3630_v24 }
0x1742   :  { %4222 = vmatpush3.msra.mxu1 %v3630_v24  ;;  %v3868_v24 = vld [vmem:[%s4945_s12] ss:$0 sm:$0xff] }
0x1743   :  { %4223 = vmatprep.subr.mxu1 %v3629_v25 }
0x1744   :  { %4224 = vmatpush3.msra.mxu1 %v3629_v25 }
0x1745   :  { %4225 = vmatprep.subr.mxu1 %v3628_v26 }
0x1746   :  { %4226 = vmatpush3.msra.mxu1 %v3628_v26 }
0x1747   :  { %4227 = vmatprep.subr.mxu1 %v3627_v27 }
0x1748   :  { %4228 = vmatpush3.msra.mxu1 %v3627_v27 }
0x1749   :  { %4229 = vmatprep.subr.mxu1 %v3626_v28 }
0x174a   :  { %4230 = vmatpush3.msra.mxu1 %v3626_v28 }
0x174b   :  { %4231 = vmatprep.subr.mxu1 %v3625_v29 }
0x174c   :  { %4232 = vmatpush3.msra.mxu1 %v3625_v29 }
0x174d   :  { %4233 = vmatprep.subr.mxu1 %v3624_v44 }
0x174e   :  { %4234 = vmatpush3.msra.mxu1 %v3624_v44 }
0x174f   :  { %4235 = vmatprep.subr.mxu1 %v3623_v45 }
0x1750   :  { %4236 = vmatpush3.msra.mxu1 %v3623_v45 }
0x1751   :  { %4237 = vmatprep.subr.mxu1 %v3622_v46 }
0x1752   :  { %4238 = vmatpush3.msra.mxu1 %v3622_v46 }
0x1753   :  { %4239 = vmatprep.subr.mxu1 %v3621_v47 }
0x1754   :  { %4240 = vmatpush3.msra.mxu1 %v3621_v47 }
0x17f5   :  { %v4197_v59 = vpop.f32.mrf.mxu1 }
0x17f6   :  { %v3481_v60 = vadd.f32 %v4197_v59, %v3065_v38 }
0x17f7   :  { %v3471_v61 = vpop.f32.mrf.mxu1 }
0x17f8   :  { %v3480_v11 = vadd.f32 %v3471_v61, %v3064_v40  ;;  %v3487_v62 = vsel %vm58_vm0, %v3481_v60, 0.0 }
0x17f9   :  { %3488 = vadd.xlane.f32.xlu0 %v3487_v62 }
0x17fa   :  { %v3484_v63 = vsel %vm58_vm0, %v3480_v11, 0.0 }
0x17fb   :  { %3485 = vadd.xlane.f32.xlu1 %v3484_v63 }
0x1882   :  { %v3489_v0 = vpop.xlane.xlu0 %3488 }
0x1883   :  { %v3492_v1 = vmul.f32 0.03125, %v3489_v0 }
0x1884   :  { %v3486_v2 = vpop.xlane.xlu1 %3485 }
0x1885   :  { %v4832_v3 = vsub.f32 %v3481_v60, %v3492_v1  ;;  %v3491_v4 = vmul.f32 0.03125, %v3486_v2 }
0x1887   :  { %v4834_v7 = vsub.f32 %v3480_v11, %v3491_v4  ;;  %v3496_v8 = vmul.f32 %v4832_v3, %v4832_v3 }
0x1889   :  { %v3500_v9 = vsel %vm58_vm0, %v3496_v8, 0.0  ;;  %v3495_v12 = vmul.f32 %v4834_v7, %v4834_v7 }
0x188a   :  { %3501 = vadd.xlane.f32.xlu0 %v3500_v9 }
0x188b   :  { %v3497_v13 = vsel %vm58_vm0, %v3495_v12, 0.0 }
0x188c   :  { %3498 = vadd.xlane.f32.xlu1 %v3497_v13 }
0x1913   :  { %v3502_v30 = vpop.xlane.xlu0 %3501 }
0x1914   :  { %v3504_v31 = vmul.f32 0.03125, %v3502_v30 }
0x1915   :  { %v3499_v32 = vpop.xlane.xlu1 %3498 }
0x1916   :  { %v3506_v33 = vadd.f32 1e-05, %v3504_v31  ;;  %v3503_v34 = vmul.f32 0.03125, %v3499_v32 }
0x1918   :  { %4336 = vrsqrt.f32 %v3506_v33  ;;  %v3505_v35 = vadd.f32 1e-05, %v3503_v34 }
0x191a   :  { %4338 = vrsqrt.f32 %v3505_v35 }
0x1925   :  { %v4337_v36 = vpop.eup %4336 }
0x1926   :  { %v3510_v38 = vmul.f32 %v4337_v36, %v4832_v3 }
0x1927   :  { %v4339_v39 = vpop.eup %4338 }
0x1928   :  { %v3509_v40 = vmul.f32 %v4339_v39, %v4834_v7  ;;  %v3518_v41 = vmul.f32 %v3861_v37, %v3510_v38 }
0x192a   :  { %v3517_v42 = vmul.f32 %v3861_v37, %v3509_v40  ;;  %v3526_v43 = vadd.f32 %v3862_v5, %v3518_v41 }
0x192c   :  { %v3525_v6 = vadd.f32 %v3862_v5, %v3517_v42 }
0x192e   :  { %4206 = vmatprep.mubr.msk.f32.mxu0 %vm58_vm0, %v3525_v6 }
0x192f   :  { %4207 = vmatmul.mubr.msk.f32.vlgmr.msra.gmra.mxu0 %vm58_vm0, %v3526_v43 }
0x19ef   :  { %v4208_v49 = vpop.f32.mrf.mxu0 }
0x19f0   :  { %v3616_v50 = vadd.f32 %v4208_v49, %v3863_v48 }
0x19f1   :  { %v3610_v10 = vpop.f32.mrf.mxu0 }
0x19f2   :  { %v3611_v51 = vadd.f32 %v3863_v48, %v3610_v10  ;;  %v3620_v53 = vmax.f32 %v3616_v50, 0.0 }
0x19f4   :  { %v3619_v52 = vmax.f32 %v3611_v51, 0.0 }
0x19f6   :  { %4241 = vmatprep.mubr.f32.mxu1 %v3619_v52 }
0x19f7   :  { %4242 = vmatmul.mubr.f32.vlgmr.msra.gmra.mxu1 %v3620_v53 }
0x1ab7   :  { %v4243_v55 = vpop.f32.mrf.mxu1 }
0x1ab8   :  { %v3716_v56 = vadd.f32 %v4243_v55, %v3866_v54 }
0x1ab9   :  { %v3710_v57 = vpop.f32.mrf.mxu1 }
0x1aba   :  { %v3720_v58 = vmax.f32 %v3716_v56, 0.0  ;;  %v3711_v59 = vadd.f32 %v3866_v54, %v3710_v57 }
0x1abc   :  { %v3719_v60 = vmax.f32 %v3711_v59, 0.0  ;;  %v3722_v61 = vadd.f32 %v3720_v58, %v3526_v43 }
0x1abe   :  { %v3728_v11 = vsel %vm58_vm0, %v3722_v61, 0.0  ;;  %v3721_v62 = vadd.f32 %v3719_v60, %v3525_v6 }
0x1abf   :  { %3729 = vadd.xlane.f32.xlu0 %v3728_v11 }
0x1ac0   :  { %v3725_v63 = vsel %vm58_vm0, %v3721_v62, 0.0 }
0x1ac1   :  { %3726 = vadd.xlane.f32.xlu1 %v3725_v63 }
0x1b48   :  { %v3730_v0 = vpop.xlane.xlu0 %3729 }
0x1b49   :  { %v3732_v1 = vmul.f32 0.03125, %v3730_v0 }
0x1b4a   :  { %v3727_v2 = vpop.xlane.xlu1 %3726 }
0x1b4b   :  { %v3734_v3 = vsub.f32 %v3722_v61, %v3732_v1  ;;  %v3731_v4 = vmul.f32 0.03125, %v3727_v2 }
0x1b4d   :  { %v3733_v7 = vsub.f32 %v3721_v62, %v3731_v4  ;;  %v3736_v8 = vmul.f32 %v3734_v3, %v3734_v3 }
0x1b4f   :  { %v3740_v9 = vsel %vm58_vm0, %v3736_v8, 0.0  ;;  %v3735_v12 = vmul.f32 %v3733_v7, %v3733_v7 }
0x1b50   :  { %3741 = vadd.xlane.f32.xlu0 %v3740_v9 }
0x1b51   :  { %v3737_v13 = vsel %vm58_vm0, %v3735_v12, 0.0 }
0x1b52   :  { %3738 = vadd.xlane.f32.xlu1 %v3737_v13 }
0x1bd9   :  { %v3742_v14 = vpop.xlane.xlu0 %3741 }
0x1bda   :  { %v3744_v15 = vmul.f32 0.03125, %v3742_v14 }
0x1bdb   :  { %v3739_v16 = vpop.xlane.xlu1 %3738 }
0x1bdc   :  { %v3746_v17 = vadd.f32 1e-05, %v3744_v15  ;;  %v3743_v18 = vmul.f32 0.03125, %v3739_v16 }
0x1bde   :  { %4340 = vrsqrt.f32 %v3746_v17  ;;  %v3745_v19 = vadd.f32 1e-05, %v3743_v18 }
0x1be0   :  { %4342 = vrsqrt.f32 %v3745_v19 }
0x1beb   :  { %v4341_v20 = vpop.eup %4340 }
0x1bec   :  { %v3750_v22 = vmul.f32 %v4341_v20, %v3734_v3 }
0x1bed   :  { %v4343_v23 = vpop.eup %4342 }
0x1bee   :  { %v3749_v25 = vmul.f32 %v4343_v23, %v3733_v7  ;;  %v3758_v26 = vmul.f32 %v3867_v21, %v3750_v22 }
0x1bf0   :  { %v3757_v27 = vmul.f32 %v3867_v21, %v3749_v25  ;;  %v3766_v28 = vadd.f32 %v3868_v24, %v3758_v26 }
0x1bf2   :  { %v3765_v29 = vadd.f32 %v3868_v24, %v3757_v27  ;;  %3768 = vst.msk [vmem:[#allocation2 + $0x8] sm:$0xff] %vm58_vm0, %v3766_v28 }
0x1bf4   :  { %3767 = vst.msk [vmem:[#allocation2] sm:$0xff] %vm58_vm0, %v3765_v29 }
0x1bf5   :  { %4355 = shalt.err (!%p4352_p4)
}
0x1bf6   :  { %s4392_s11 = smov 128   ;;  %s4393_s12 = smov 8  }
0x1bf7   :  { %3780 = dma.vmem_to_hbm [thread:$0]  %s3775_s14, 256, %s4946_s13, [#allocation3], %s4392_s11, %s4392_s11, %s4393_s12  }
0x1bf8   :  { %4364 = dma.done.wait [#allocation3], 256  }
0x1bf9   :  { %4365 = vsyncadd [#allocation3], 4294967040 }
0x1bfa   :  { %3784 = vsyncpa [#allocation3], 1 }

</bundles_post_ra>
